<compile_context>
chip_gen: v7x
topology: tpu7x:2x2x1
jax: 0.10.0
libtpu: 0.0.40
codegen_flags: <defaults>
</compile_context>

<pallas_src>
import functools
import math

import jax
import jax.numpy as jnp
from jax.experimental import pallas as pl
from jax.experimental.pallas import tpu as pltpu


VOCAB = 100
HIDDEN = 32
NUM_HEADS = 4
HEAD_DIM = HIDDEN // NUM_HEADS
FFN = 4 * HIDDEN
NUM_LAYERS = 2
MAX_SEQ = 8
OUTPUT_DIM = 3
HEAD_PAD = 128          # lane-dense padding for the classifier output
LN_EPS = 1e-12


def _ln(x, gamma, beta, eps):
    mean = jnp.mean(x, axis=-1, keepdims=True)
    var = jnp.mean((x - mean) ** 2, axis=-1, keepdims=True)
    return (x - mean) * jax.lax.rsqrt(var + eps) * gamma + beta


# ------------------------- fused forward kernel ---------------------------

def _fused_forward_kernel(
        x_ref, emb_g_ref, emb_b_ref,
        wqkv_ref, bqkv_ref, wo_ref, bo_ref,
        ln1g_ref, ln1b_ref, w1_ref, b1_ref, w2_ref, b2_ref,
        ln2g_ref, ln2b_ref,
        fcw_ref, fcb_ref,
        out_ref,
        act_ref, ctx_ref,
        *, batch, seq, num_heads, head_dim, eps):
    """One grid step == one encoder layer; activation resident in VMEM scratch."""
    l = pl.program_id(0)
    hidden = num_heads * head_dim
    bf16 = jnp.bfloat16

    # Embedding LayerNorm on the first grid step only.
    @pl.when(l == 0)
    def _():
        act_ref[...] = _ln(x_ref[...], emb_g_ref[...], emb_b_ref[...], eps)

    x = act_ref[...]                                            # (B*S, H) f32
    xb = x.astype(bf16)

    # Fused Q/K/V projection: one MXU pass over the concatenated (H, 3H) weight.
    # 1/sqrt(head_dim) is already folded into the Q columns at init time.
    qkv = jnp.dot(xb, wqkv_ref[0], preferred_element_type=jnp.float32) + bqkv_ref[0]
    qkv3 = qkv.reshape(batch, seq, 3 * hidden)                  # split rows only

    # Per-head attention, batched over the batch axis (rank-3 einsums, no k.T);
    # each head's context is written into a lane slice of the ctx scratch
    # instead of being concatenated.
    for h in range(num_heads):
        lo = h * head_dim
        qh = qkv3[:, :, lo:lo + head_dim].astype(bf16)
        kh = qkv3[:, :, hidden + lo:hidden + lo + head_dim].astype(bf16)
        vh = qkv3[:, :, 2 * hidden + lo:2 * hidden + lo + head_dim].astype(bf16)
        s = jnp.einsum("bqd,bkd->bqk", qh, kh,
                       preferred_element_type=jnp.float32)      # (B, S, S) f32
        s = s - jnp.max(s, axis=-1, keepdims=True)
        p = jnp.exp(s)
        p = p * pl.reciprocal(jnp.sum(p, axis=-1, keepdims=True), approx=True)
        ctxh = jnp.einsum("bqk,bkd->bqd", p.astype(bf16), vh,
                          preferred_element_type=jnp.float32)   # (B, S, hd)
        ctx_ref[:, lo:lo + head_dim] = ctxh.reshape(batch * seq, head_dim)

    ctx = ctx_ref[...].astype(bf16)
    attn = jnp.dot(ctx, wo_ref[0], preferred_element_type=jnp.float32) + bo_ref[0]
    x1 = _ln(x + attn, ln1g_ref[0], ln1b_ref[0], eps)

    # FFN: gelu(x1 @ w1 + b1) @ w2 + b2.
    # TODO(synk): jax.nn.gelu defaults to the tanh approximation; HF BERT uses
    # exact erf GELU (~1e-3 divergence).  Kept tanh form for Mosaic lowering.
    h1 = jax.nn.gelu(jnp.dot(x1.astype(bf16), w1_ref[0],
                             preferred_element_type=jnp.float32) + b1_ref[0])
    ffn = jnp.dot(h1.astype(bf16), w2_ref[0],
                  preferred_element_type=jnp.float32) + b2_ref[0]
    x2 = _ln(x1 + ffn, ln2g_ref[0], ln2b_ref[0], eps)
    act_ref[...] = x2

    # Classifier head fused into the last grid step: cls row -> tanh -> fc,
    # output lane-padded to 128 columns so the store is an unmasked vst.
    @pl.when(l == pl.num_programs(0) - 1)
    def _():
        cls = x2.reshape(batch, seq, hidden)[:, 0, :]           # (B, H)
        hcls = jnp.tanh(cls).astype(bf16)
        out_ref[...] = (jnp.dot(hcls, fcw_ref[...],
                                preferred_element_type=jnp.float32)
                        + fcb_ref[...])


def fused_forward(params, x_emb, batch, seq):
    """Single pallas_call for LN(emb) + all encoder layers + tanh/fc head."""
    kern = functools.partial(
        _fused_forward_kernel, batch=batch, seq=seq,
        num_heads=NUM_HEADS, head_dim=HEAD_DIM, eps=LN_EPS)

    def const_spec(a):      # whole array, same block every grid step
        return pl.BlockSpec(a.shape, lambda l: (0, 0))

    def layer_spec(a):      # stacked (L, ...) array, block = layer l's slice
        return pl.BlockSpec((1,) + a.shape[1:], lambda l: (l, 0, 0))

    args = [
        x_emb, params["emb_ln_g"], params["emb_ln_b"],
        params["wqkv"], params["bqkv"], params["wo"], params["bo"],
        params["ln1_g"], params["ln1_b"], params["w1"], params["b1"],
        params["w2"], params["b2"], params["ln2_g"], params["ln2_b"],
        params["fc_w_pad"], params["fc_b_pad"],
    ]
    # NOTE: at real bert-base shapes the constant-index specs (x_emb, emb LN,
    # fc weights) should get pipeline_mode=pl.Buffered(1) (revisited blocks,
    # double-buffering is wasted VMEM) and the per-layer matmuls need a tiled
    # (M,N,K) grid with f32 VMEM accumulators (tn=128 on v5e, 256 on v6e/v7x;
    # bf16 weights keep the ~64 MiB v7x VMEM budget).  Irrelevant at H=32.
    in_specs = ([const_spec(args[0]), const_spec(args[1]), const_spec(args[2])]
                + [layer_spec(a) for a in args[3:15]]
                + [const_spec(args[15]), const_spec(args[16])])

    return pl.pallas_call(
        kern,
        out_shape=jax.ShapeDtypeStruct((batch, HEAD_PAD), jnp.float32),
        grid=(NUM_LAYERS,),
        in_specs=in_specs,
        out_specs=pl.BlockSpec((batch, HEAD_PAD), lambda l: (0, 0)),
        scratch_shapes=[
            pltpu.VMEM((batch * seq, HIDDEN), jnp.float32),   # resident activation
            pltpu.VMEM((batch * seq, HIDDEN), jnp.float32),   # attention context
        ],
        compiler_params=pltpu.CompilerParams(
            dimension_semantics=("arbitrary",),               # layers are sequential
            vmem_limit_bytes=32 * 1024 * 1024),
    )(*args)


# --------------------------- params & forward ------------------------------

def init_params(key):
    def nrm(k, shape, scale=0.02):
        return scale * jax.random.normal(k, shape, dtype=jnp.float32)

    keys = iter(jax.random.split(key, 32))
    fc_w = nrm(next(keys), (HIDDEN, OUTPUT_DIM))
    fc_b = jnp.zeros((OUTPUT_DIM,), jnp.float32)

    # Per-layer weights, stacked along a leading layer axis.
    scale = 1.0 / math.sqrt(HEAD_DIM)
    wqkv, wo, w1, w2 = [], [], [], []
    for _ in range(NUM_LAYERS):
        w = nrm(next(keys), (HIDDEN, 3 * HIDDEN))
        # fold the attention 1/sqrt(head_dim) scale into the Q columns
        w = w.at[:, :HIDDEN].multiply(scale)
        wqkv.append(w)
        wo.append(nrm(next(keys), (HIDDEN, HIDDEN)))
        w1.append(nrm(next(keys), (HIDDEN, FFN)))
        w2.append(nrm(next(keys), (FFN, HIDDEN)))

    params = {
        "tok_emb": nrm(next(keys), (VOCAB, HIDDEN)),
        "pos_emb": nrm(next(keys), (MAX_SEQ, HIDDEN)),
        "emb_ln_g": jnp.ones((1, HIDDEN), jnp.float32),
        "emb_ln_b": jnp.zeros((1, HIDDEN), jnp.float32),
        # matmul weights stored bf16 (MXU-native, half the DMA/VMEM bytes);
        # biases / LN params stay f32 (v5e has no bf16 VALU).
        "wqkv": jnp.stack(wqkv).astype(jnp.bfloat16),                 # (L, H, 3H)
        "bqkv": jnp.zeros((NUM_LAYERS, 1, 3 * HIDDEN), jnp.float32),
        "wo": jnp.stack(wo).astype(jnp.bfloat16),                     # (L, H, H)
        "bo": jnp.zeros((NUM_LAYERS, 1, HIDDEN), jnp.float32),
        "ln1_g": jnp.ones((NUM_LAYERS, 1, HIDDEN), jnp.float32),
        "ln1_b": jnp.zeros((NUM_LAYERS, 1, HIDDEN), jnp.float32),
        "w1": jnp.stack(w1).astype(jnp.bfloat16),                     # (L, H, F)
        "b1": jnp.zeros((NUM_LAYERS, 1, FFN), jnp.float32),
        "w2": jnp.stack(w2).astype(jnp.bfloat16),                     # (L, F, H)
        "b2": jnp.zeros((NUM_LAYERS, 1, HIDDEN), jnp.float32),
        "ln2_g": jnp.ones((NUM_LAYERS, 1, HIDDEN), jnp.float32),
        "ln2_b": jnp.zeros((NUM_LAYERS, 1, HIDDEN), jnp.float32),
        # classifier weights lane-padded to 128 output columns (sliced back to
        # OUTPUT_DIM outside the kernel).
        "fc_w_pad": jnp.zeros((HIDDEN, HEAD_PAD), jnp.float32)
                       .at[:, :OUTPUT_DIM].set(fc_w).astype(jnp.bfloat16),
        "fc_b_pad": jnp.zeros((1, HEAD_PAD), jnp.float32)
                       .at[0, :OUTPUT_DIM].set(fc_b),
    }
    return params


def transformer_forward(params, ids):
    """Matches PyTorch Transformer.forward: BERT -> cls hidden -> tanh -> fc.
    No attention mask: the reference forward calls transformer(ids) with no
    mask argument (all-ones mask), so unmasked attention matches it."""
    B, S = ids.shape
    # embedding lookup + position embedding (plain JAX gather)
    x = jnp.take(params["tok_emb"], ids, axis=0) + params["pos_emb"][None, :S, :]
    x = x.reshape(B * S, HIDDEN)
    pred = fused_forward(params, x, B, S)       # (B, 128)
    return pred[:, :OUTPUT_DIM]


def forward_reference(params, ids):
    """Pure-JAX reference (same math, exact division) for validation."""
    B, S = ids.shape
    H = HIDDEN
    bf16 = jnp.bfloat16
    x = jnp.take(params["tok_emb"], ids, axis=0) + params["pos_emb"][None, :S, :]
    x = x.reshape(B * S, H)
    x = _ln(x, params["emb_ln_g"], params["emb_ln_b"], LN_EPS)
    for l in range(NUM_LAYERS):
        qkv = jnp.dot(x.astype(bf16), params["wqkv"][l],
                      preferred_element_type=jnp.float32) + params["bqkv"][l]
        qkv3 = qkv.reshape(B, S, 3 * H)
        heads = []
        for h in range(NUM_HEADS):
            lo = h * HEAD_DIM
            qh = qkv3[:, :, lo:lo + HEAD_DIM].astype(bf16)
            kh = qkv3[:, :, H + lo:H + lo + HEAD_DIM].astype(bf16)
            vh = qkv3[:, :, 2 * H + lo:2 * H + lo + HEAD_DIM].astype(bf16)
            s = jnp.einsum("bqd,bkd->bqk", qh, kh,
                           preferred_element_type=jnp.float32)
            s = s - jnp.max(s, axis=-1, keepdims=True)
            p = jnp.exp(s)
            p = p / jnp.sum(p, axis=-1, keepdims=True)
            heads.append(jnp.einsum("bqk,bkd->bqd", p.astype(bf16), vh,
                                    preferred_element_type=jnp.float32))
        ctx = jnp.concatenate(heads, axis=-1).reshape(B * S, H).astype(bf16)
        attn = jnp.dot(ctx, params["wo"][l],
                       preferred_element_type=jnp.float32) + params["bo"][l]
        x1 = _ln(x + attn, params["ln1_g"][l], params["ln1_b"][l], LN_EPS)
        h1 = jax.nn.gelu(jnp.dot(x1.astype(bf16), params["w1"][l],
                                 preferred_element_type=jnp.float32) + params["b1"][l])
        ffn = jnp.dot(h1.astype(bf16), params["w2"][l],
                      preferred_element_type=jnp.float32) + params["b2"][l]
        x = _ln(x1 + ffn, params["ln2_g"][l], params["ln2_b"][l], LN_EPS)
    cls = x.reshape(B, S, H)[:, 0, :]
    out = jnp.dot(jnp.tanh(cls).astype(bf16), params["fc_w_pad"],
                  preferred_element_type=jnp.float32) + params["fc_b_pad"]
    return out[:, :OUTPUT_DIM]


if __name__ == "__main__":
    key = jax.random.PRNGKey(0)
    pkey, ikey = jax.random.split(key)
    params = init_params(pkey)

    batch, seq = 2, MAX_SEQ
    ids = jax.random.randint(ikey, (batch, seq), 0, VOCAB, dtype=jnp.int32)

    pred = jax.jit(transformer_forward)(params, ids)
    jax.block_until_ready(pred)
    ref = jax.jit(forward_reference)(params, ids)
    jax.block_until_ready(ref)

    assert pred.shape == (batch, OUTPUT_DIM)
    assert bool(jnp.all(jnp.isfinite(pred)))
    # approx reciprocal in the kernel softmax vs exact division in the reference
    assert bool(jnp.allclose(pred, ref, atol=2e-2, rtol=2e-2))
    print("KERNEL_OK")
</pallas_src>

<mosaic_0001>
module attributes {stable_mosaic.version = 11 : i64} {
  func.func @_fused_forward_kernel(%arg0: i32, %arg1: memref<16x32xf32, #tpu.memory_space<vmem>>, %arg2: memref<1x32xf32, #tpu.memory_space<vmem>>, %arg3: memref<1x32xf32, #tpu.memory_space<vmem>>, %arg4: memref<1x32x96xbf16, #tpu.memory_space<vmem>>, %arg5: memref<1x1x96xf32, #tpu.memory_space<vmem>>, %arg6: memref<1x32x32xbf16, #tpu.memory_space<vmem>>, %arg7: memref<1x1x32xf32, #tpu.memory_space<vmem>>, %arg8: memref<1x1x32xf32, #tpu.memory_space<vmem>>, %arg9: memref<1x1x32xf32, #tpu.memory_space<vmem>>, %arg10: memref<1x32x128xbf16, #tpu.memory_space<vmem>>, %arg11: memref<1x1x128xf32, #tpu.memory_space<vmem>>, %arg12: memref<1x128x32xbf16, #tpu.memory_space<vmem>>, %arg13: memref<1x1x32xf32, #tpu.memory_space<vmem>>, %arg14: memref<1x1x32xf32, #tpu.memory_space<vmem>>, %arg15: memref<1x1x32xf32, #tpu.memory_space<vmem>>, %arg16: memref<32x128xbf16, #tpu.memory_space<vmem>>, %arg17: memref<1x128xf32, #tpu.memory_space<vmem>>, %arg18: memref<2x128xf32, #tpu.memory_space<vmem>>, %arg19: memref<16x32xf32, #tpu.memory_space<vmem>>, %arg20: memref<16x32xf32, #tpu.memory_space<vmem>>) attributes {dimension_semantics = [#tpu.dimension_semantics<arbitrary>], iteration_bounds = array<i64: 2>, scalar_prefetch = 0 : i64, scratch_operands = 2 : i64, tpu.core_type = #tpu.core_type<tc>, window_params = [{pipeline_mode = #tpu.pipeline_mode<synchronous>, transform_indices = @transform_0, window_bounds = array<i64: 16, 32>}, {pipeline_mode = #tpu.pipeline_mode<synchronous>, transform_indices = @transform_1, window_bounds = array<i64: 1, 32>}, {pipeline_mode = #tpu.pipeline_mode<synchronous>, transform_indices = @transform_2, window_bounds = array<i64: 1, 32>}, {transform_indices = @transform_3, window_bounds = array<i64: 1, 32, 96>}, {transform_indices = @transform_4, window_bounds = array<i64: 1, 1, 96>}, {transform_indices = @transform_5, window_bounds = array<i64: 1, 32, 32>}, {transform_indices = @transform_6, window_bounds = array<i64: 1, 1, 32>}, {transform_indices = @transform_7, window_bounds = array<i64: 1, 1, 32>}, {transform_indices = @transform_8, window_bounds = array<i64: 1, 1, 32>}, {transform_indices = @transform_9, window_bounds = array<i64: 1, 32, 128>}, {transform_indices = @transform_10, window_bounds = array<i64: 1, 1, 128>}, {transform_indices = @transform_11, window_bounds = array<i64: 1, 128, 32>}, {transform_indices = @transform_12, window_bounds = array<i64: 1, 1, 32>}, {transform_indices = @transform_13, window_bounds = array<i64: 1, 1, 32>}, {transform_indices = @transform_14, window_bounds = array<i64: 1, 1, 32>}, {pipeline_mode = #tpu.pipeline_mode<synchronous>, transform_indices = @transform_15, window_bounds = array<i64: 32, 128>}, {pipeline_mode = #tpu.pipeline_mode<synchronous>, transform_indices = @transform_16, window_bounds = array<i64: 1, 128>}, {pipeline_mode = #tpu.pipeline_mode<synchronous>, transform_indices = @transform_17, window_bounds = array<i64: 2, 128>}]} {
    %c0_i32 = arith.constant 0 : i32
    %0 = arith.cmpi eq, %arg0, %c0_i32 : i32
    %1 = arith.extui %0 : i1 to i32
    %c0_i32_0 = arith.constant 0 : i32
    %2 = arith.cmpi ne, %1, %c0_i32_0 : i32
    scf.if %2 {
      %c0_81 = arith.constant 0 : index
      %c0_82 = arith.constant 0 : index
      %193 = vector.load %arg1[%c0_81, %c0_82] : memref<16x32xf32, #tpu.memory_space<vmem>>, vector<16x32xf32>
      %c0_83 = arith.constant 0 : index
      %c0_84 = arith.constant 0 : index
      %194 = vector.load %arg2[%c0_83, %c0_84] : memref<1x32xf32, #tpu.memory_space<vmem>>, vector<1x32xf32>
      %c0_85 = arith.constant 0 : index
      %c0_86 = arith.constant 0 : index
      %195 = vector.load %arg3[%c0_85, %c0_86] : memref<1x32xf32, #tpu.memory_space<vmem>>, vector<1x32xf32>
      %cst_87 = arith.constant dense<0.000000e+00> : vector<16xf32>
      %196 = vector.multi_reduction <add>, %193, %cst_87 [1] : vector<16x32xf32> to vector<16xf32>
      %197 = vector.shape_cast %196 : vector<16xf32> to vector<16x1xf32>
      %cst_88 = arith.constant 3.200000e+01 : f32
      %198 = vector.broadcast %cst_88 : f32 to vector<16x1xf32>
      %199 = arith.divf %197, %198 : vector<16x1xf32>
      %200 = vector.broadcast %199 : vector<16x1xf32> to vector<16x32xf32>
      %201 = arith.subf %193, %200 : vector<16x32xf32>
      %202 = arith.mulf %201, %201 : vector<16x32xf32>
      %cst_89 = arith.constant dense<0.000000e+00> : vector<16xf32>
      %203 = vector.multi_reduction <add>, %202, %cst_89 [1] : vector<16x32xf32> to vector<16xf32>
      %204 = vector.shape_cast %203 : vector<16xf32> to vector<16x1xf32>
      %cst_90 = arith.constant 3.200000e+01 : f32
      %205 = vector.broadcast %cst_90 : f32 to vector<16x1xf32>
      %206 = arith.divf %204, %205 : vector<16x1xf32>
      %207 = vector.broadcast %199 : vector<16x1xf32> to vector<16x32xf32>
      %208 = arith.subf %193, %207 : vector<16x32xf32>
      %cst_91 = arith.constant 9.99999996E-13 : f32
      %209 = vector.broadcast %cst_91 : f32 to vector<16x1xf32>
      %210 = arith.addf %206, %209 : vector<16x1xf32>
      %211 = math.rsqrt %210 : vector<16x1xf32>
      %212 = vector.broadcast %211 : vector<16x1xf32> to vector<16x32xf32>
      %213 = arith.mulf %208, %212 : vector<16x32xf32>
      %214 = vector.broadcast %194 : vector<1x32xf32> to vector<16x32xf32>
      %215 = arith.mulf %213, %214 : vector<16x32xf32>
      %216 = vector.broadcast %195 : vector<1x32xf32> to vector<16x32xf32>
      %217 = arith.addf %215, %216 : vector<16x32xf32>
      %c0_92 = arith.constant 0 : index
      %c0_93 = arith.constant 0 : index
      %218 = vector.load %arg19[%c0_92, %c0_93] : memref<16x32xf32, #tpu.memory_space<vmem>>, vector<16x32xf32>
      tpu.vector_store %arg19[%c0_92, %c0_93], %217 {strides = array<i32>} : memref<16x32xf32, #tpu.memory_space<vmem>>, vector<16x32xf32>,
    } else {
    }
    %c0 = arith.constant 0 : index
    %c0_1 = arith.constant 0 : index
    %3 = vector.load %arg19[%c0, %c0_1] : memref<16x32xf32, #tpu.memory_space<vmem>>, vector<16x32xf32>
    %4 = arith.truncf %3 : vector<16x32xf32> to vector<16x32xbf16>
    %c0_2 = arith.constant 0 : index
    %c0_3 = arith.constant 0 : index
    %c0_4 = arith.constant 0 : index
    %5 = vector.load %arg4[%c0_2, %c0_3, %c0_4] : memref<1x32x96xbf16, #tpu.memory_space<vmem>>, vector<1x32x96xbf16>
    %6 = vector.shape_cast %5 : vector<1x32x96xbf16> to vector<32x96xbf16>
    %cst = arith.constant dense<0.000000e+00> : vector<16x96xf32>
    %7 = tpu.matmul %4, %6, %cst {dimension_numbers = #tpu.dot_dimension_numbers<[1], [0], [0], [1], [0, 0, 1, 1], [], []>} : vector<16x32xbf16>, vector<32x96xbf16>, vector<16x96xf32> -> vector<16x96xf32>
    %c0_5 = arith.constant 0 : index
    %c0_6 = arith.constant 0 : index
    %c0_7 = arith.constant 0 : index
    %8 = vector.load %arg5[%c0_5, %c0_6, %c0_7] : memref<1x1x96xf32, #tpu.memory_space<vmem>>, vector<1x1x96xf32>
    %9 = vector.shape_cast %8 : vector<1x1x96xf32> to vector<1x96xf32>
    %10 = vector.broadcast %9 : vector<1x96xf32> to vector<16x96xf32>
    %11 = arith.addf %7, %10 : vector<16x96xf32>
    %12 = vector.shape_cast %11 : vector<16x96xf32> to vector<2x8x96xf32>
    %13 = vector.extract_strided_slice %12 {offsets = [0, 0, 0], sizes = [2, 8, 8], strides = [1, 1, 1]} : vector<2x8x96xf32> to vector<2x8x8xf32>
    %14 = arith.truncf %13 : vector<2x8x8xf32> to vector<2x8x8xbf16>
    %15 = vector.extract_strided_slice %12 {offsets = [0, 0, 32], sizes = [2, 8, 8], strides = [1, 1, 1]} : vector<2x8x96xf32> to vector<2x8x8xf32>
    %16 = arith.truncf %15 : vector<2x8x8xf32> to vector<2x8x8xbf16>
    %17 = vector.extract_strided_slice %12 {offsets = [0, 0, 64], sizes = [2, 8, 8], strides = [1, 1, 1]} : vector<2x8x96xf32> to vector<2x8x8xf32>
    %18 = arith.truncf %17 : vector<2x8x8xf32> to vector<2x8x8xbf16>
    "tpu.trace_start"() <{level = 10 : i32, message = "bqd,bkd->bqk"}> : () -> ()
    %cst_8 = arith.constant dense<0.000000e+00> : vector<2x8x8xf32>
    %19 = tpu.matmul %14, %16, %cst_8 {dimension_numbers = #tpu.dot_dimension_numbers<[2], [2], [1], [1], [0, 0, 0, 1, 1, 1], [0], [0]>} : vector<2x8x8xbf16>, vector<2x8x8xbf16>, vector<2x8x8xf32> -> vector<2x8x8xf32>
    "tpu.trace_stop"() : () -> ()
    %cst_9 = arith.constant dense<0xFF800000> : vector<2x8xf32>
    %20 = vector.multi_reduction <maximumf>, %19, %cst_9 [2] : vector<2x8x8xf32> to vector<2x8xf32>
    %21 = vector.shape_cast %20 : vector<2x8xf32> to vector<2x8x1xf32>
    %22 = vector.broadcast %21 : vector<2x8x1xf32> to vector<2x8x8xf32>
    %23 = arith.subf %19, %22 : vector<2x8x8xf32>
    %24 = math.exp %23 : vector<2x8x8xf32>
    %cst_10 = arith.constant dense<0.000000e+00> : vector<2x8xf32>
    %25 = vector.multi_reduction <add>, %24, %cst_10 [2] : vector<2x8x8xf32> to vector<2x8xf32>
    %26 = vector.shape_cast %25 : vector<2x8xf32> to vector<2x8x1xf32>
    %27 = tpu.reciprocal %26 {approx = true} : vector<2x8x1xf32> -> vector<2x8x1xf32>
    %28 = vector.broadcast %27 : vector<2x8x1xf32> to vector<2x8x8xf32>
    %29 = arith.mulf %24, %28 : vector<2x8x8xf32>
    %30 = arith.truncf %29 : vector<2x8x8xf32> to vector<2x8x8xbf16>
    "tpu.trace_start"() <{level = 10 : i32, message = "bqk,bkd->bqd"}> : () -> ()
    %cst_11 = arith.constant dense<0.000000e+00> : vector<2x8x8xf32>
    %31 = tpu.matmul %30, %18, %cst_11 {dimension_numbers = #tpu.dot_dimension_numbers<[2], [1], [1], [2], [0, 0, 0, 1, 1, 2], [0], [0]>} : vector<2x8x8xbf16>, vector<2x8x8xbf16>, vector<2x8x8xf32> -> vector<2x8x8xf32>
    "tpu.trace_stop"() : () -> ()
    %32 = vector.shape_cast %31 : vector<2x8x8xf32> to vector<16x8xf32>
    %c0_12 = arith.constant 0 : index
    %c0_13 = arith.constant 0 : index
    %33 = vector.load %arg20[%c0_12, %c0_13] : memref<16x32xf32, #tpu.memory_space<vmem>>, vector<16x8xf32>
    tpu.vector_store %arg20[%c0_12, %c0_13], %32 {strides = array<i32>} : memref<16x32xf32, #tpu.memory_space<vmem>>, vector<16x8xf32>,
    %34 = vector.extract_strided_slice %12 {offsets = [0, 0, 8], sizes = [2, 8, 8], strides = [1, 1, 1]} : vector<2x8x96xf32> to vector<2x8x8xf32>
    %35 = arith.truncf %34 : vector<2x8x8xf32> to vector<2x8x8xbf16>
    %36 = vector.extract_strided_slice %12 {offsets = [0, 0, 40], sizes = [2, 8, 8], strides = [1, 1, 1]} : vector<2x8x96xf32> to vector<2x8x8xf32>
    %37 = arith.truncf %36 : vector<2x8x8xf32> to vector<2x8x8xbf16>
    %38 = vector.extract_strided_slice %12 {offsets = [0, 0, 72], sizes = [2, 8, 8], strides = [1, 1, 1]} : vector<2x8x96xf32> to vector<2x8x8xf32>
    %39 = arith.truncf %38 : vector<2x8x8xf32> to vector<2x8x8xbf16>
    "tpu.trace_start"() <{level = 10 : i32, message = "bqd,bkd->bqk"}> : () -> ()
    %cst_14 = arith.constant dense<0.000000e+00> : vector<2x8x8xf32>
    %40 = tpu.matmul %35, %37, %cst_14 {dimension_numbers = #tpu.dot_dimension_numbers<[2], [2], [1], [1], [0, 0, 0, 1, 1, 1], [0], [0]>} : vector<2x8x8xbf16>, vector<2x8x8xbf16>, vector<2x8x8xf32> -> vector<2x8x8xf32>
    "tpu.trace_stop"() : () -> ()
    %cst_15 = arith.constant dense<0xFF800000> : vector<2x8xf32>
    %41 = vector.multi_reduction <maximumf>, %40, %cst_15 [2] : vector<2x8x8xf32> to vector<2x8xf32>
    %42 = vector.shape_cast %41 : vector<2x8xf32> to vector<2x8x1xf32>
    %43 = vector.broadcast %42 : vector<2x8x1xf32> to vector<2x8x8xf32>
    %44 = arith.subf %40, %43 : vector<2x8x8xf32>
    %45 = math.exp %44 : vector<2x8x8xf32>
    %cst_16 = arith.constant dense<0.000000e+00> : vector<2x8xf32>
    %46 = vector.multi_reduction <add>, %45, %cst_16 [2] : vector<2x8x8xf32> to vector<2x8xf32>
    %47 = vector.shape_cast %46 : vector<2x8xf32> to vector<2x8x1xf32>
    %48 = tpu.reciprocal %47 {approx = true} : vector<2x8x1xf32> -> vector<2x8x1xf32>
    %49 = vector.broadcast %48 : vector<2x8x1xf32> to vector<2x8x8xf32>
    %50 = arith.mulf %45, %49 : vector<2x8x8xf32>
    %51 = arith.truncf %50 : vector<2x8x8xf32> to vector<2x8x8xbf16>
    "tpu.trace_start"() <{level = 10 : i32, message = "bqk,bkd->bqd"}> : () -> ()
    %cst_17 = arith.constant dense<0.000000e+00> : vector<2x8x8xf32>
    %52 = tpu.matmul %51, %39, %cst_17 {dimension_numbers = #tpu.dot_dimension_numbers<[2], [1], [1], [2], [0, 0, 0, 1, 1, 2], [0], [0]>} : vector<2x8x8xbf16>, vector<2x8x8xbf16>, vector<2x8x8xf32> -> vector<2x8x8xf32>
    "tpu.trace_stop"() : () -> ()
    %53 = vector.shape_cast %52 : vector<2x8x8xf32> to vector<16x8xf32>
    %c0_18 = arith.constant 0 : index
    %c8 = arith.constant 8 : index
    %54 = vector.load %arg20[%c0_18, %c8] : memref<16x32xf32, #tpu.memory_space<vmem>>, vector<16x8xf32>
    tpu.vector_store %arg20[%c0_18, %c8], %53 {strides = array<i32>} : memref<16x32xf32, #tpu.memory_space<vmem>>, vector<16x8xf32>,
    %55 = vector.extract_strided_slice %12 {offsets = [0, 0, 16], sizes = [2, 8, 8], strides = [1, 1, 1]} : vector<2x8x96xf32> to vector<2x8x8xf32>
    %56 = arith.truncf %55 : vector<2x8x8xf32> to vector<2x8x8xbf16>
    %57 = vector.extract_strided_slice %12 {offsets = [0, 0, 48], sizes = [2, 8, 8], strides = [1, 1, 1]} : vector<2x8x96xf32> to vector<2x8x8xf32>
    %58 = arith.truncf %57 : vector<2x8x8xf32> to vector<2x8x8xbf16>
    %59 = vector.extract_strided_slice %12 {offsets = [0, 0, 80], sizes = [2, 8, 8], strides = [1, 1, 1]} : vector<2x8x96xf32> to vector<2x8x8xf32>
    %60 = arith.truncf %59 : vector<2x8x8xf32> to vector<2x8x8xbf16>
    "tpu.trace_start"() <{level = 10 : i32, message = "bqd,bkd->bqk"}> : () -> ()
    %cst_19 = arith.constant dense<0.000000e+00> : vector<2x8x8xf32>
    %61 = tpu.matmul %56, %58, %cst_19 {dimension_numbers = #tpu.dot_dimension_numbers<[2], [2], [1], [1], [0, 0, 0, 1, 1, 1], [0], [0]>} : vector<2x8x8xbf16>, vector<2x8x8xbf16>, vector<2x8x8xf32> -> vector<2x8x8xf32>
    "tpu.trace_stop"() : () -> ()
    %cst_20 = arith.constant dense<0xFF800000> : vector<2x8xf32>
    %62 = vector.multi_reduction <maximumf>, %61, %cst_20 [2] : vector<2x8x8xf32> to vector<2x8xf32>
    %63 = vector.shape_cast %62 : vector<2x8xf32> to vector<2x8x1xf32>
    %64 = vector.broadcast %63 : vector<2x8x1xf32> to vector<2x8x8xf32>
    %65 = arith.subf %61, %64 : vector<2x8x8xf32>
    %66 = math.exp %65 : vector<2x8x8xf32>
    %cst_21 = arith.constant dense<0.000000e+00> : vector<2x8xf32>
    %67 = vector.multi_reduction <add>, %66, %cst_21 [2] : vector<2x8x8xf32> to vector<2x8xf32>
    %68 = vector.shape_cast %67 : vector<2x8xf32> to vector<2x8x1xf32>
    %69 = tpu.reciprocal %68 {approx = true} : vector<2x8x1xf32> -> vector<2x8x1xf32>
    %70 = vector.broadcast %69 : vector<2x8x1xf32> to vector<2x8x8xf32>
    %71 = arith.mulf %66, %70 : vector<2x8x8xf32>
    %72 = arith.truncf %71 : vector<2x8x8xf32> to vector<2x8x8xbf16>
    "tpu.trace_start"() <{level = 10 : i32, message = "bqk,bkd->bqd"}> : () -> ()
    %cst_22 = arith.constant dense<0.000000e+00> : vector<2x8x8xf32>
    %73 = tpu.matmul %72, %60, %cst_22 {dimension_numbers = #tpu.dot_dimension_numbers<[2], [1], [1], [2], [0, 0, 0, 1, 1, 2], [0], [0]>} : vector<2x8x8xbf16>, vector<2x8x8xbf16>, vector<2x8x8xf32> -> vector<2x8x8xf32>
    "tpu.trace_stop"() : () -> ()
    %74 = vector.shape_cast %73 : vector<2x8x8xf32> to vector<16x8xf32>
    %c0_23 = arith.constant 0 : index
    %c16 = arith.constant 16 : index
    %75 = vector.load %arg20[%c0_23, %c16] : memref<16x32xf32, #tpu.memory_space<vmem>>, vector<16x8xf32>
    tpu.vector_store %arg20[%c0_23, %c16], %74 {strides = array<i32>} : memref<16x32xf32, #tpu.memory_space<vmem>>, vector<16x8xf32>,
    %76 = vector.extract_strided_slice %12 {offsets = [0, 0, 24], sizes = [2, 8, 8], strides = [1, 1, 1]} : vector<2x8x96xf32> to vector<2x8x8xf32>
    %77 = arith.truncf %76 : vector<2x8x8xf32> to vector<2x8x8xbf16>
    %78 = vector.extract_strided_slice %12 {offsets = [0, 0, 56], sizes = [2, 8, 8], strides = [1, 1, 1]} : vector<2x8x96xf32> to vector<2x8x8xf32>
    %79 = arith.truncf %78 : vector<2x8x8xf32> to vector<2x8x8xbf16>
    %80 = vector.extract_strided_slice %12 {offsets = [0, 0, 88], sizes = [2, 8, 8], strides = [1, 1, 1]} : vector<2x8x96xf32> to vector<2x8x8xf32>
    %81 = arith.truncf %80 : vector<2x8x8xf32> to vector<2x8x8xbf16>
    "tpu.trace_start"() <{level = 10 : i32, message = "bqd,bkd->bqk"}> : () -> ()
    %cst_24 = arith.constant dense<0.000000e+00> : vector<2x8x8xf32>
    %82 = tpu.matmul %77, %79, %cst_24 {dimension_numbers = #tpu.dot_dimension_numbers<[2], [2], [1], [1], [0, 0, 0, 1, 1, 1], [0], [0]>} : vector<2x8x8xbf16>, vector<2x8x8xbf16>, vector<2x8x8xf32> -> vector<2x8x8xf32>
    "tpu.trace_stop"() : () -> ()
    %cst_25 = arith.constant dense<0xFF800000> : vector<2x8xf32>
    %83 = vector.multi_reduction <maximumf>, %82, %cst_25 [2] : vector<2x8x8xf32> to vector<2x8xf32>
    %84 = vector.shape_cast %83 : vector<2x8xf32> to vector<2x8x1xf32>
    %85 = vector.broadcast %84 : vector<2x8x1xf32> to vector<2x8x8xf32>
    %86 = arith.subf %82, %85 : vector<2x8x8xf32>
    %87 = math.exp %86 : vector<2x8x8xf32>
    %cst_26 = arith.constant dense<0.000000e+00> : vector<2x8xf32>
    %88 = vector.multi_reduction <add>, %87, %cst_26 [2] : vector<2x8x8xf32> to vector<2x8xf32>
    %89 = vector.shape_cast %88 : vector<2x8xf32> to vector<2x8x1xf32>
    %90 = tpu.reciprocal %89 {approx = true} : vector<2x8x1xf32> -> vector<2x8x1xf32>
    %91 = vector.broadcast %90 : vector<2x8x1xf32> to vector<2x8x8xf32>
    %92 = arith.mulf %87, %91 : vector<2x8x8xf32>
    %93 = arith.truncf %92 : vector<2x8x8xf32> to vector<2x8x8xbf16>
    "tpu.trace_start"() <{level = 10 : i32, message = "bqk,bkd->bqd"}> : () -> ()
    %cst_27 = arith.constant dense<0.000000e+00> : vector<2x8x8xf32>
    %94 = tpu.matmul %93, %81, %cst_27 {dimension_numbers = #tpu.dot_dimension_numbers<[2], [1], [1], [2], [0, 0, 0, 1, 1, 2], [0], [0]>} : vector<2x8x8xbf16>, vector<2x8x8xbf16>, vector<2x8x8xf32> -> vector<2x8x8xf32>
    "tpu.trace_stop"() : () -> ()
    %95 = vector.shape_cast %94 : vector<2x8x8xf32> to vector<16x8xf32>
    %c0_28 = arith.constant 0 : index
    %c24 = arith.constant 24 : index
    %96 = vector.load %arg20[%c0_28, %c24] : memref<16x32xf32, #tpu.memory_space<vmem>>, vector<16x8xf32>
    tpu.vector_store %arg20[%c0_28, %c24], %95 {strides = array<i32>} : memref<16x32xf32, #tpu.memory_space<vmem>>, vector<16x8xf32>,
    %c0_29 = arith.constant 0 : index
    %c0_30 = arith.constant 0 : index
    %97 = vector.load %arg20[%c0_29, %c0_30] : memref<16x32xf32, #tpu.memory_space<vmem>>, vector<16x32xf32>
    %98 = arith.truncf %97 : vector<16x32xf32> to vector<16x32xbf16>
    %c0_31 = arith.constant 0 : index
    %c0_32 = arith.constant 0 : index
    %c0_33 = arith.constant 0 : index
    %99 = vector.load %arg6[%c0_31, %c0_32, %c0_33] : memref<1x32x32xbf16, #tpu.memory_space<vmem>>, vector<1x32x32xbf16>
    %100 = vector.shape_cast %99 : vector<1x32x32xbf16> to vector<32x32xbf16>
    %cst_34 = arith.constant dense<0.000000e+00> : vector<16x32xf32>
    %101 = tpu.matmul %98, %100, %cst_34 {dimension_numbers = #tpu.dot_dimension_numbers<[1], [0], [0], [1], [0, 0, 1, 1], [], []>} : vector<16x32xbf16>, vector<32x32xbf16>, vector<16x32xf32> -> vector<16x32xf32>
    %c0_35 = arith.constant 0 : index
    %c0_36 = arith.constant 0 : index
    %c0_37 = arith.constant 0 : index
    %102 = vector.load %arg7[%c0_35, %c0_36, %c0_37] : memref<1x1x32xf32, #tpu.memory_space<vmem>>, vector<1x1x32xf32>
    %103 = vector.shape_cast %102 : vector<1x1x32xf32> to vector<1x32xf32>
    %104 = vector.broadcast %103 : vector<1x32xf32> to vector<16x32xf32>
    %105 = arith.addf %101, %104 : vector<16x32xf32>
    %106 = arith.addf %3, %105 : vector<16x32xf32>
    %c0_38 = arith.constant 0 : index
    %c0_39 = arith.constant 0 : index
    %c0_40 = arith.constant 0 : index
    %107 = vector.load %arg8[%c0_38, %c0_39, %c0_40] : memref<1x1x32xf32, #tpu.memory_space<vmem>>, vector<1x1x32xf32>
    %108 = vector.shape_cast %107 : vector<1x1x32xf32> to vector<1x32xf32>
    %c0_41 = arith.constant 0 : index
    %c0_42 = arith.constant 0 : index
    %c0_43 = arith.constant 0 : index
    %109 = vector.load %arg9[%c0_41, %c0_42, %c0_43] : memref<1x1x32xf32, #tpu.memory_space<vmem>>, vector<1x1x32xf32>
    %110 = vector.shape_cast %109 : vector<1x1x32xf32> to vector<1x32xf32>
    %cst_44 = arith.constant dense<0.000000e+00> : vector<16xf32>
    %111 = vector.multi_reduction <add>, %106, %cst_44 [1] : vector<16x32xf32> to vector<16xf32>
    %112 = vector.shape_cast %111 : vector<16xf32> to vector<16x1xf32>
    %cst_45 = arith.constant 3.200000e+01 : f32
    %113 = vector.broadcast %cst_45 : f32 to vector<16x1xf32>
    %114 = arith.divf %112, %113 : vector<16x1xf32>
    %115 = vector.broadcast %114 : vector<16x1xf32> to vector<16x32xf32>
    %116 = arith.subf %106, %115 : vector<16x32xf32>
    %117 = arith.mulf %116, %116 : vector<16x32xf32>
    %cst_46 = arith.constant dense<0.000000e+00> : vector<16xf32>
    %118 = vector.multi_reduction <add>, %117, %cst_46 [1] : vector<16x32xf32> to vector<16xf32>
    %119 = vector.shape_cast %118 : vector<16xf32> to vector<16x1xf32>
    %cst_47 = arith.constant 3.200000e+01 : f32
    %120 = vector.broadcast %cst_47 : f32 to vector<16x1xf32>
    %121 = arith.divf %119, %120 : vector<16x1xf32>
    %122 = vector.broadcast %114 : vector<16x1xf32> to vector<16x32xf32>
    %123 = arith.subf %106, %122 : vector<16x32xf32>
    %cst_48 = arith.constant 9.99999996E-13 : f32
    %124 = vector.broadcast %cst_48 : f32 to vector<16x1xf32>
    %125 = arith.addf %121, %124 : vector<16x1xf32>
    %126 = math.rsqrt %125 : vector<16x1xf32>
    %127 = vector.broadcast %126 : vector<16x1xf32> to vector<16x32xf32>
    %128 = arith.mulf %123, %127 : vector<16x32xf32>
    %129 = vector.broadcast %108 : vector<1x32xf32> to vector<16x32xf32>
    %130 = arith.mulf %128, %129 : vector<16x32xf32>
    %131 = vector.broadcast %110 : vector<1x32xf32> to vector<16x32xf32>
    %132 = arith.addf %130, %131 : vector<16x32xf32>
    %133 = arith.truncf %132 : vector<16x32xf32> to vector<16x32xbf16>
    %c0_49 = arith.constant 0 : index
    %c0_50 = arith.constant 0 : index
    %c0_51 = arith.constant 0 : index
    %134 = vector.load %arg10[%c0_49, %c0_50, %c0_51] : memref<1x32x128xbf16, #tpu.memory_space<vmem>>, vector<1x32x128xbf16>
    %135 = vector.shape_cast %134 : vector<1x32x128xbf16> to vector<32x128xbf16>
    %cst_52 = arith.constant dense<0.000000e+00> : vector<16x128xf32>
    %136 = tpu.matmul %133, %135, %cst_52 {dimension_numbers = #tpu.dot_dimension_numbers<[1], [0], [0], [1], [0, 0, 1, 1], [], []>} : vector<16x32xbf16>, vector<32x128xbf16>, vector<16x128xf32> -> vector<16x128xf32>
    %c0_53 = arith.constant 0 : index
    %c0_54 = arith.constant 0 : index
    %c0_55 = arith.constant 0 : index
    %137 = vector.load %arg11[%c0_53, %c0_54, %c0_55] : memref<1x1x128xf32, #tpu.memory_space<vmem>>, vector<1x1x128xf32>
    %138 = vector.shape_cast %137 : vector<1x1x128xf32> to vector<1x128xf32>
    %139 = vector.broadcast %138 : vector<1x128xf32> to vector<16x128xf32>
    %140 = arith.addf %136, %139 : vector<16x128xf32>
    %141 = arith.mulf %140, %140 : vector<16x128xf32>
    %142 = arith.mulf %140, %141 : vector<16x128xf32>
    %cst_56 = arith.constant 4.471500e-02 : f32
    %143 = vector.broadcast %cst_56 : f32 to vector<16x128xf32>
    %144 = arith.mulf %143, %142 : vector<16x128xf32>
    %145 = arith.addf %140, %144 : vector<16x128xf32>
    %cst_57 = arith.constant 0.797884583 : f32
    %146 = vector.broadcast %cst_57 : f32 to vector<16x128xf32>
    %147 = arith.mulf %146, %145 : vector<16x128xf32>
    %148 = math.tanh %147 : vector<16x128xf32>
    %cst_58 = arith.constant 1.000000e+00 : f32
    %149 = vector.broadcast %cst_58 : f32 to vector<16x128xf32>
    %150 = arith.addf %149, %148 : vector<16x128xf32>
    %cst_59 = arith.constant 5.000000e-01 : f32
    %151 = vector.broadcast %cst_59 : f32 to vector<16x128xf32>
    %152 = arith.mulf %151, %150 : vector<16x128xf32>
    %153 = arith.mulf %140, %152 : vector<16x128xf32>
    %154 = arith.truncf %153 : vector<16x128xf32> to vector<16x128xbf16>
    %c0_60 = arith.constant 0 : index
    %c0_61 = arith.constant 0 : index
    %c0_62 = arith.constant 0 : index
    %155 = vector.load %arg12[%c0_60, %c0_61, %c0_62] : memref<1x128x32xbf16, #tpu.memory_space<vmem>>, vector<1x128x32xbf16>
    %156 = vector.shape_cast %155 : vector<1x128x32xbf16> to vector<128x32xbf16>
    %cst_63 = arith.constant dense<0.000000e+00> : vector<16x32xf32>
    %157 = tpu.matmul %154, %156, %cst_63 {dimension_numbers = #tpu.dot_dimension_numbers<[1], [0], [0], [1], [0, 0, 1, 1], [], []>} : vector<16x128xbf16>, vector<128x32xbf16>, vector<16x32xf32> -> vector<16x32xf32>
    %c0_64 = arith.constant 0 : index
    %c0_65 = arith.constant 0 : index
    %c0_66 = arith.constant 0 : index
    %158 = vector.load %arg13[%c0_64, %c0_65, %c0_66] : memref<1x1x32xf32, #tpu.memory_space<vmem>>, vector<1x1x32xf32>
    %159 = vector.shape_cast %158 : vector<1x1x32xf32> to vector<1x32xf32>
    %160 = vector.broadcast %159 : vector<1x32xf32> to vector<16x32xf32>
    %161 = arith.addf %157, %160 : vector<16x32xf32>
    %162 = arith.addf %132, %161 : vector<16x32xf32>
    %c0_67 = arith.constant 0 : index
    %c0_68 = arith.constant 0 : index
    %c0_69 = arith.constant 0 : index
    %163 = vector.load %arg14[%c0_67, %c0_68, %c0_69] : memref<1x1x32xf32, #tpu.memory_space<vmem>>, vector<1x1x32xf32>
    %164 = vector.shape_cast %163 : vector<1x1x32xf32> to vector<1x32xf32>
    %c0_70 = arith.constant 0 : index
    %c0_71 = arith.constant 0 : index
    %c0_72 = arith.constant 0 : index
    %165 = vector.load %arg15[%c0_70, %c0_71, %c0_72] : memref<1x1x32xf32, #tpu.memory_space<vmem>>, vector<1x1x32xf32>
    %166 = vector.shape_cast %165 : vector<1x1x32xf32> to vector<1x32xf32>
    %cst_73 = arith.constant dense<0.000000e+00> : vector<16xf32>
    %167 = vector.multi_reduction <add>, %162, %cst_73 [1] : vector<16x32xf32> to vector<16xf32>
    %168 = vector.shape_cast %167 : vector<16xf32> to vector<16x1xf32>
    %cst_74 = arith.constant 3.200000e+01 : f32
    %169 = vector.broadcast %cst_74 : f32 to vector<16x1xf32>
    %170 = arith.divf %168, %169 : vector<16x1xf32>
    %171 = vector.broadcast %170 : vector<16x1xf32> to vector<16x32xf32>
    %172 = arith.subf %162, %171 : vector<16x32xf32>
    %173 = arith.mulf %172, %172 : vector<16x32xf32>
    %cst_75 = arith.constant dense<0.000000e+00> : vector<16xf32>
    %174 = vector.multi_reduction <add>, %173, %cst_75 [1] : vector<16x32xf32> to vector<16xf32>
    %175 = vector.shape_cast %174 : vector<16xf32> to vector<16x1xf32>
    %cst_76 = arith.constant 3.200000e+01 : f32
    %176 = vector.broadcast %cst_76 : f32 to vector<16x1xf32>
    %177 = arith.divf %175, %176 : vector<16x1xf32>
    %178 = vector.broadcast %170 : vector<16x1xf32> to vector<16x32xf32>
    %179 = arith.subf %162, %178 : vector<16x32xf32>
    %cst_77 = arith.constant 9.99999996E-13 : f32
    %180 = vector.broadcast %cst_77 : f32 to vector<16x1xf32>
    %181 = arith.addf %177, %180 : vector<16x1xf32>
    %182 = math.rsqrt %181 : vector<16x1xf32>
    %183 = vector.broadcast %182 : vector<16x1xf32> to vector<16x32xf32>
    %184 = arith.mulf %179, %183 : vector<16x32xf32>
    %185 = vector.broadcast %164 : vector<1x32xf32> to vector<16x32xf32>
    %186 = arith.mulf %184, %185 : vector<16x32xf32>
    %187 = vector.broadcast %166 : vector<1x32xf32> to vector<16x32xf32>
    %188 = arith.addf %186, %187 : vector<16x32xf32>
    %c0_78 = arith.constant 0 : index
    %c0_79 = arith.constant 0 : index
    %189 = vector.load %arg19[%c0_78, %c0_79] : memref<16x32xf32, #tpu.memory_space<vmem>>, vector<16x32xf32>
    tpu.vector_store %arg19[%c0_78, %c0_79], %188 {strides = array<i32>} : memref<16x32xf32, #tpu.memory_space<vmem>>, vector<16x32xf32>,
    %c1_i32 = arith.constant 1 : i32
    %190 = arith.cmpi eq, %arg0, %c1_i32 : i32
    %191 = arith.extui %190 : i1 to i32
    %c0_i32_80 = arith.constant 0 : i32
    %192 = arith.cmpi ne, %191, %c0_i32_80 : i32
    scf.if %192 {
      %193 = vector.shape_cast %188 : vector<16x32xf32> to vector<2x8x32xf32>
      %194 = vector.extract_strided_slice %193 {offsets = [0, 0, 0], sizes = [2, 1, 32], strides = [1, 1, 1]} : vector<2x8x32xf32> to vector<2x1x32xf32>
      %195 = vector.shape_cast %194 : vector<2x1x32xf32> to vector<2x32xf32>
      %196 = math.tanh %195 : vector<2x32xf32>
      %197 = arith.truncf %196 : vector<2x32xf32> to vector<2x32xbf16>
      %c0_81 = arith.constant 0 : index
      %c0_82 = arith.constant 0 : index
      %198 = vector.load %arg16[%c0_81, %c0_82] : memref<32x128xbf16, #tpu.memory_space<vmem>>, vector<32x128xbf16>
      %cst_83 = arith.constant dense<0.000000e+00> : vector<2x128xf32>
      %199 = tpu.matmul %197, %198, %cst_83 {dimension_numbers = #tpu.dot_dimension_numbers<[1], [0], [0], [1], [0, 0, 1, 1], [], []>} : vector<2x32xbf16>, vector<32x128xbf16>, vector<2x128xf32> -> vector<2x128xf32>
      %c0_84 = arith.constant 0 : index
      %c0_85 = arith.constant 0 : index
      %200 = vector.load %arg17[%c0_84, %c0_85] : memref<1x128xf32, #tpu.memory_space<vmem>>, vector<1x128xf32>
      %201 = vector.broadcast %200 : vector<1x128xf32> to vector<2x128xf32>
      %202 = arith.addf %199, %201 : vector<2x128xf32>
      %c0_86 = arith.constant 0 : index
      %c0_87 = arith.constant 0 : index
      %203 = vector.load %arg18[%c0_86, %c0_87] : memref<2x128xf32, #tpu.memory_space<vmem>>, vector<2x128xf32>
      tpu.vector_store %arg18[%c0_86, %c0_87], %202 {strides = array<i32>} : memref<2x128xf32, #tpu.memory_space<vmem>>, vector<2x128xf32>,
    } else {
    }
    return
  }
  func.func @transform_0(%arg0: i32) -> (i32, i32) {
    %c0_i32 = arith.constant 0 : i32
    %c0_i32_0 = arith.constant 0 : i32
    %c0_i32_1 = arith.constant 0 : i32
    return %c0_i32, %c0_i32_0 : i32, i32
  }
  func.func @transform_1(%arg0: i32) -> (i32, i32) {
    %c0_i32 = arith.constant 0 : i32
    %c0_i32_0 = arith.constant 0 : i32
    %c0_i32_1 = arith.constant 0 : i32
    return %c0_i32, %c0_i32_0 : i32, i32
  }
  func.func @transform_2(%arg0: i32) -> (i32, i32) {
    %c0_i32 = arith.constant 0 : i32
    %c0_i32_0 = arith.constant 0 : i32
    %c0_i32_1 = arith.constant 0 : i32
    return %c0_i32, %c0_i32_0 : i32, i32
  }
  func.func @transform_3(%arg0: i32) -> (i32, i32, i32) {
    %c0_i32 = arith.constant 0 : i32
    %c0_i32_0 = arith.constant 0 : i32
    %c0_i32_1 = arith.constant 0 : i32
    return %arg0, %c0_i32, %c0_i32_0 : i32, i32, i32
  }
  func.func @transform_4(%arg0: i32) -> (i32, i32, i32) {
    %c0_i32 = arith.constant 0 : i32
    %c0_i32_0 = arith.constant 0 : i32
    %c0_i32_1 = arith.constant 0 : i32
    return %arg0, %c0_i32, %c0_i32_0 : i32, i32, i32
  }
  func.func @transform_5(%arg0: i32) -> (i32, i32, i32) {
    %c0_i32 = arith.constant 0 : i32
    %c0_i32_0 = arith.constant 0 : i32
    %c0_i32_1 = arith.constant 0 : i32
    return %arg0, %c0_i32, %c0_i32_0 : i32, i32, i32
  }
  func.func @transform_6(%arg0: i32) -> (i32, i32, i32) {
    %c0_i32 = arith.constant 0 : i32
    %c0_i32_0 = arith.constant 0 : i32
    %c0_i32_1 = arith.constant 0 : i32
    return %arg0, %c0_i32, %c0_i32_0 : i32, i32, i32
  }
  func.func @transform_7(%arg0: i32) -> (i32, i32, i32) {
    %c0_i32 = arith.constant 0 : i32
    %c0_i32_0 = arith.constant 0 : i32
    %c0_i32_1 = arith.constant 0 : i32
    return %arg0, %c0_i32, %c0_i32_0 : i32, i32, i32
  }
  func.func @transform_8(%arg0: i32) -> (i32, i32, i32) {
    %c0_i32 = arith.constant 0 : i32
    %c0_i32_0 = arith.constant 0 : i32
    %c0_i32_1 = arith.constant 0 : i32
    return %arg0, %c0_i32, %c0_i32_0 : i32, i32, i32
  }
  func.func @transform_9(%arg0: i32) -> (i32, i32, i32) {
    %c0_i32 = arith.constant 0 : i32
    %c0_i32_0 = arith.constant 0 : i32
    %c0_i32_1 = arith.constant 0 : i32
    return %arg0, %c0_i32, %c0_i32_0 : i32, i32, i32
  }
  func.func @transform_10(%arg0: i32) -> (i32, i32, i32) {
    %c0_i32 = arith.constant 0 : i32
    %c0_i32_0 = arith.constant 0 : i32
    %c0_i32_1 = arith.constant 0 : i32
    return %arg0, %c0_i32, %c0_i32_0 : i32, i32, i32
  }
  func.func @transform_11(%arg0: i32) -> (i32, i32, i32) {
    %c0_i32 = arith.constant 0 : i32
    %c0_i32_0 = arith.constant 0 : i32
    %c0_i32_1 = arith.constant 0 : i32
    return %arg0, %c0_i32, %c0_i32_0 : i32, i32, i32
  }
  func.func @transform_12(%arg0: i32) -> (i32, i32, i32) {
    %c0_i32 = arith.constant 0 : i32
    %c0_i32_0 = arith.constant 0 : i32
    %c0_i32_1 = arith.constant 0 : i32
    return %arg0, %c0_i32, %c0_i32_0 : i32, i32, i32
  }
  func.func @transform_13(%arg0: i32) -> (i32, i32, i32) {
    %c0_i32 = arith.constant 0 : i32
    %c0_i32_0 = arith.constant 0 : i32
    %c0_i32_1 = arith.constant 0 : i32
    return %arg0, %c0_i32, %c0_i32_0 : i32, i32, i32
  }
  func.func @transform_14(%arg0: i32) -> (i32, i32, i32) {
    %c0_i32 = arith.constant 0 : i32
    %c0_i32_0 = arith.constant 0 : i32
    %c0_i32_1 = arith.constant 0 : i32
    return %arg0, %c0_i32, %c0_i32_0 : i32, i32, i32
  }
  func.func @transform_15(%arg0: i32) -> (i32, i32) {
    %c0_i32 = arith.constant 0 : i32
    %c0_i32_0 = arith.constant 0 : i32
    %c0_i32_1 = arith.constant 0 : i32
    return %c0_i32, %c0_i32_0 : i32, i32
  }
  func.func @transform_16(%arg0: i32) -> (i32, i32) {
    %c0_i32 = arith.constant 0 : i32
    %c0_i32_0 = arith.constant 0 : i32
    %c0_i32_1 = arith.constant 0 : i32
    return %c0_i32, %c0_i32_0 : i32, i32
  }
  func.func @transform_17(%arg0: i32) -> (i32, i32) {
    %c0_i32 = arith.constant 0 : i32
    %c0_i32_0 = arith.constant 0 : i32
    %c0_i32_1 = arith.constant 0 : i32
    return %c0_i32, %c0_i32_0 : i32, i32
  }
}

</mosaic_0001>

<bundles_post_ra>
// kernel: transformer_forward.1
= control target key start
LH: loop header
LB: loop body
LE: loop exit
PB: predicated region body
PF: predicated region fallthrough
CT: control target
= control target key end

     0   :  { %s3234_s0 = inlined_call_operand.vmem [shape: f32[16,32], index: 0, kind: input, shape index: {}]   ;;  %s3235_s1 = inlined_call_operand.vmem [shape: f32[1,32], index: 1, kind: input, shape index: {}]   ;;  %s3236_s2 = inlined_call_operand.vmem [shape: f32[1,32], index: 2, kind: input, shape index: {}]   ;;  %s3237_s3 = inlined_call_operand.vmem [shape: bf16[2,32,96], index: 3, kind: input, shape index: {}]   ;;  %s3238_s4 = inlined_call_operand.vmem [shape: f32[2,1,96], index: 4, kind: input, shape index: {}]   ;;  %s3239_s5 = inlined_call_operand.vmem [shape: bf16[2,32,32], index: 5, kind: input, shape index: {}]   ;;  %s3240_s6 = inlined_call_operand.vmem [shape: f32[2,1,32], index: 6, kind: input, shape index: {}]   ;;  %s3241_s7 = inlined_call_operand.vmem [shape: f32[2,1,32], index: 7, kind: input, shape index: {}]   ;;  %s3242_s8 = inlined_call_operand.vmem [shape: f32[2,1,32], index: 8, kind: input, shape index: {}]   ;;  %s3243_s9 = inlined_call_operand.vmem [shape: bf16[2,32,128], index: 9, kind: input, shape index: {}]   ;;  %s3244_s10 = inlined_call_operand.vmem [shape: f32[2,1,128], index: 10, kind: input, shape index: {}]   ;;  %s3245_s11 = inlined_call_operand.vmem [shape: bf16[2,128,32], index: 11, kind: input, shape index: {}]   ;;  %s3246_s12 = inlined_call_operand.vmem [shape: f32[2,1,32], index: 12, kind: input, shape index: {}]   ;;  %s3247_s13 = inlined_call_operand.vmem [shape: f32[2,1,32], index: 13, kind: input, shape index: {}]   ;;  %s3248_s14 = inlined_call_operand.vmem [shape: f32[2,1,32], index: 14, kind: input, shape index: {}]   ;;  %s3249_s15 = inlined_call_operand.vmem [shape: bf16[32,128], index: 15, kind: input, shape index: {}]   ;;  %s3250_s16 = inlined_call_operand.vmem [shape: f32[1,128], index: 16, kind: input, shape index: {}]   ;;  %s3251_s17 = inlined_call_operand.hbm [shape: f32[2,128], index: 17, kind: output, shape index: {}]  }
   0x1   :  { %3257 = sst [smem:[#allocation9_spill]] %s3234_s0 }
   0x2   :  { %3258 = sst [smem:[#allocation10_spill]] %s3235_s1 }
   0x3   :  { %3259 = sst [smem:[#allocation11_spill]] %s3237_s3 }
   0x4   :  { %3260 = sst [smem:[#allocation12_spill]] %s3239_s5 }
   0x5   :  { %3261 = sst [smem:[#allocation13_spill]] %s3249_s15 }
   0x6   :  { %3262 = sst [smem:[#allocation14_spill]] %s3250_s16 }
   0x7   :  { %3263 = sst [smem:[#allocation15_spill]] %s3251_s17 }
   0x8   :  { %22 = vsyncpa [#allocation5], 0  ;;  %s2869_s24 = smov 0  }
   0x9 LB: > { %3264 = sst [smem:[#allocation7_spill]] %s2758_s24  ;;  %s2875_s25 = sadd.s32 4294967295, %s2758_s24   ;;  %s2758_s24 = sphi %s2869_s24, %s28_s24  }
   0xa   : > { %p2354_p0 = scmp.ge.s32.totalorder %s2758_s24, 1  ;;  %p577_p1 = scmp.lt.s32.totalorder %s2758_s24, 3 }
   0xc   : > { %p578_p2 = pnand %p2354_p0, %p577_p1 }
   0xe   : > { %581 = sbr.rel (%p578_p2) target bundleno = 4755 (0x1293), region = 88 }
  0x15   : > { %p663_p3 = scmp.lt.s32.totalorder %s2875_s25, 1  ;;  %s3265_s3 = sld [smem:[#allocation11_spill]] }
  0x16   : > { %s3266_s5 = sld [smem:[#allocation12_spill]]  ;;  %p2363_p4 = scmp.ne.s32.totalorder %s2875_s25, 0 }
  0x17   : > { %s2881_s26 = scalar_select %p663_p3, %s2875_s25, 1 }
  0x18   : > { %711 = sbr.rel (%p2363_p4) target bundleno = 349 (0x15d), region = 92  ;;  %s3268_s22 = sld [smem:[#allocation9_spill]] (!%p2363_p4)  ;;  %vm716_vm0 = vcmask (!%p2363_p4), 261120   ;;  %v2365_v23 = vld [vmem:[%s3236_s2] ss:$0 sm:$0xff] (!%p2363_p4) }
  0x19   : > { %s2416_s27 = sshll.u32 %s2881_s26, 4  ;;  %s700_s28 = scalar_lea.vmem %s3246_s12, %s2881_s26 }
  0x1a   : > { %s703_s30 = scalar_lea.vmem %s3247_s13, %s2881_s26  ;;  %s706_s15 = scalar_lea.vmem %s3248_s14, %s2881_s26 }
  0x1b   : > { %s2891_s19 = scalar_lea.vmem %s3265_s3, %s2416_s27  ;;  %s2913_s3 = scalar_lea.vmem %s3243_s9, %s2416_s27 }
  0x1c   : > { %s2896_s21 = scalar_lea.vmem %s3266_s5, %s2416_s27  ;;  %s692_s5 = scalar_lea.vmem %s3244_s10, %s2881_s26 }
  0x1d   : > { %3267 = sst [smem:[#allocation8_spill]] %s2896_s21  ;;  %s2419_s21 = sshll.u32 %s2881_s26, 6 }
  0x1e   : > { %s2923_s24 = scalar_lea.vmem %s3245_s11, %s2419_s21  ;;  %v712_v0 = vld [vmem:[%s3268_s22] sm:$0xff] (!%p2363_p4)  ;;  %v713_v1 = vld [vmem:[%s3268_s22 + $0x8] sm:$0xff] (!%p2363_p4)  ;;  %s3269_s17 = sld [smem:[#allocation10_spill]] (!%p2363_p4) }
  0x1f   : > { %v717_v2 = vsel %vm716_vm0, %v712_v0, 0.0  ;;  %v720_v3 = vsel %vm716_vm0, %v713_v1, 0.0 }
  0x20   : > { %718 = vadd.xlane.f32.xlu0 %v717_v2 }
  0x24   : > { %721 = vadd.xlane.f32.xlu0 %v720_v3  ;;  %v2364_v21 = vld [vmem:[%s3269_s17] ss:$0 sm:$0xff] }
  0xad   : > { %v719_v4 = vpop.xlane.xlu0 %718 }
  0xae   : > { %v724_v5 = vmul.f32 0.03125, %v719_v4 }
  0xb0   : > { %v726_v6 = vsub.f32 %v712_v0, %v724_v5 }
  0xb1   : > { %v722_v7 = vpop.xlane.xlu0 %721 }
  0xb2   : > { %v725_v8 = vmul.f32 0.03125, %v722_v7  ;;  %v728_v9 = vmul.f32 %v726_v6, %v726_v6 }
  0xb4   : > { %v727_v10 = vsub.f32 %v713_v1, %v725_v8  ;;  %v730_v11 = vsel %vm716_vm0, %v728_v9, 0.0 }
  0xb5   : > { %731 = vadd.xlane.f32.xlu1 %v730_v11 }
  0xb6   : > { %v729_v12 = vmul.f32 %v727_v10, %v727_v10 }
  0xb8   : > { %v733_v13 = vsel %vm716_vm0, %v729_v12, 0.0 }
  0xb9   : > { %734 = vadd.xlane.f32.xlu1 %v733_v13 }
 0x142   : > { %v732_v14 = vpop.xlane.xlu1 %731 }
 0x143   : > { %v736_v15 = vmul.f32 0.03125, %v732_v14 }
 0x145   : > { %v738_v16 = vadd.f32 1e-12, %v736_v15 }
 0x146   : > { %v735_v17 = vpop.xlane.xlu1 %734 }
 0x147   : > { %2654 = vrsqrt.f32 %v738_v16  ;;  %v737_v18 = vmul.f32 0.03125, %v735_v17 }
 0x149   : > { %v739_v19 = vadd.f32 1e-12, %v737_v18 }
 0x14b   : > { %2656 = vrsqrt.f32 %v739_v19 }
 0x151   : > { %v2655_v20 = vpop.eup %2654 }
 0x152   : > { %v742_v22 = vmul.f32 %v2655_v20, %v726_v6 }
 0x154   : > { %v750_v24 = vmul.f32 %v2364_v21, %v742_v22 }
 0x155   : > { %v2657_v25 = vpop.eup %2656 }
 0x156   : > { %v758_v26 = vadd.f32 %v2365_v23, %v750_v24  ;;  %v743_v27 = vmul.f32 %v2657_v25, %v727_v10 }
 0x158   : > { %760 = vst.msk [vmem:[#allocation2] sm:$0xff] %vm716_vm0, %v758_v26  ;;  %v751_v28 = vmul.f32 %v2364_v21, %v743_v27 }
 0x15a   : > { %v759_v29 = vadd.f32 %v2365_v23, %v751_v28 }
 0x15c   : > { %761 = vst.msk [vmem:[#allocation2 + $0x8] sm:$0xff] %vm716_vm0, %v759_v29 }
 0x15d PF: > { %v2658_v30 = vld [vmem:[%s2891_s19] sm:$0xff]   ;;  %v2760_v31 = vmov 0.0   ;;  %v2659_v32 = vld [vmem:[%s2891_s19 + $0x8] sm:$0xff]   ;;  %vm2761_vm1 = vmmov 0   ;;  %vm788_vm2 = vcmask 261120   ;;  %s3270_s1 = scalar_lea.vmem %s3238_s4, %s2881_s26  ;;  %s2762_s20 = smov 96  }
 0x15e   : > { %2473 = vmatprep.subr.bf16.mxu0 %v2760_v31  ;;  %2493 = vmatprep.subr.bf16.mxu1 %v2760_v31  ;;  %v2366_v36 = vld [vmem:[%s3270_s1] ss:$0 sm:$0xff]  ;;  %vm838_vm3 = vcmask 64512   ;;  %s2763_s21 = smov 64   ;;  %s2764_s23 = smov 88   ;;  %vm963_vm4 = vcmask 1043456  }
 0x15f   : > { %2474 = vmatpush3.bf16.msra.mxu0 %v2658_v30  ;;  %2477 = vmatprep.mubr.msk.bf16.mxu0 %vm2761_vm1, %v2760_v31  ;;  %v2962_v33 = vld [vmem:[#allocation2] sm:$0xff]  ;;  %s2765_s0 = smov 120   ;;  %s2766_s16 = smov 56   ;;  %vm1285_vm5 = vcmask 130112   ;;  %vm1516_vm6 = vcmask 195712   ;;  %vm1747_vm7 = vcmask 261312  }
 0x160   : > { %2475 = vmatprep.subr.bf16.mxu0 %v2760_v31  ;;  %2495 = vmatprep.mubr.msk.bf16.mxu1 %vm2761_vm1, %v2760_v31  ;;  %s2767_s17 = smov 80   ;;  %s2768_s29 = smov 112  }
 0x161   : > { %s2769_s27 = smov 48   ;;  %s2770_s19 = smov 72  }
 0x162   : > { %s2771_s18 = smov 104   ;;  %s2772_s1 = smov 40  }
 0x163   : > { %v2964_v34 = vld [vmem:[#allocation2 + $0x8] sm:$0xff]  ;;  %2476 = vmatpush3.bf16.msra.mxu0 %v2659_v32  ;;  %p2407_p5 = scmp.ne.s32.totalorder %s2875_s25, 1 }
 0x164   : > { %v764_v35 = vpack.c.bf16 %v2964_v34, %v2962_v33  ;;  %2481 = vmatprep.subr.bf16.mxu0 %v2760_v31  ;;  %vm2777_vm8 = vmmov (!%p2407_p5), 0   ;;  %vm2138_vm9 = vcmask (!%p2407_p5), 1041409  }
 0x166   : > { %2478 = vmatmul.mubr.msk.bf16.vlgmr.msra.gmra.mrb[0].mxu0 %vm788_vm2, %v764_v35 }
 0x167   : > { %2483 = vmatprep.mubr.msk.bf16.mxu0 %vm2761_vm1, %v2760_v31 }
 0x239   : > { %v826_v37 = vpop.f32.mrb[0].mxu0 }
 0x23a   : > { %v827_v38 = vadd.f32 %v2366_v36, %v826_v37  ;;  %v2479_v39 = vpop.f32.mrb[1].mxu0 }
 0x23b   : > { %v829_v40 = vpop.f32.mrb[2].mxu0 }
 0x23c   : > { %v2980_v41 = vpack.c.bf16 %v827_v38, %v827_v38  ;;  %v830_v42 = vadd.f32 %v2366_v36, %v829_v40  ;;  %v2480_v43 = vpop.f32.mrb[3].mxu0 }
 0x23e   : > { %836 = vrot.lane.b32.xlu0 %v2980_v41, %s2762_s20  ;;  %v2983_v44 = vpack.c.bf16 %v830_v42, %v830_v42 }
 0x242   : > { %886 = vrot.lane.b32.xlu0 %v2983_v44, %s2762_s20  ;;  %s2773_s20 = smov 8  }
 0x2b0   : > { %v837_v45 = vpop.permute.xlu0 %836 }
 0x2b1   : > { %v843_v46 = vsel %vm838_vm3, %v837_v45, 0 }
 0x2b2   : > { %2482 = vmatpush3.bf16.xpose.msra.mxu0 %v843_v46 }
 0x2b3   : > { %2487 = vmatprep.subr.bf16.mxu0 %v2760_v31 }
 0x2b4   : > { %v887_v47 = vpop.permute.xlu0 %886 }
 0x2b5   : > { %v892_v48 = vsel %vm838_vm3, %v887_v47, 0 }
 0x2b9   : > { %2484 = vmatmul.mubr.msk.bf16.vlgmr.msra.gmra.mrb[4].mxu0 %vm838_vm3, %v2980_v41 }
 0x2ba   : > { %2488 = vmatpush3.bf16.xpose.msra.mxu0 %v892_v48  ;;  %2489 = vmatprep.mubr.msk.bf16.mxu0 %vm2761_vm1, %v2760_v31 }
 0x2bb   : > { %2499 = vmatprep.subr.bf16.mxu0 %v2760_v31 }
 0x2c1   : > { %2490 = vmatmul.mubr.msk.bf16.vlgmr.msra.gmra.mrb[8].mxu0 %vm838_vm3, %v2983_v44 }
 0x2c2   : > { %2501 = vmatprep.mubr.msk.bf16.mxu0 %vm2761_vm1, %v2760_v31 }
 0x38c   : > { %v879_v49 = vpop.f32.mrb[4].mxu0 }
 0x38d   : > { %v2485_v50 = vpop.f32.mrb[5].mxu0  ;;  %v934_v51 = vsel %vm838_vm3, %v879_v49, -inf }
 0x38e   : > { %935 = vmax.xlane.f32.xlu1 %v934_v51  ;;  %v882_v52 = vpop.f32.mrb[6].mxu0 }
 0x38f   : > { %v2486_v53 = vpop.f32.mrb[7].mxu0 }
 0x394   : > { %v928_v54 = vpop.f32.mrb[8].mxu0 }
 0x395   : > { %v2491_v55 = vpop.f32.mrb[9].mxu0  ;;  %v937_v56 = vsel %vm838_vm3, %v928_v54, -inf }
 0x396   : > { %938 = vmax.xlane.f32.xlu1 %v937_v56  ;;  %v931_v57 = vpop.f32.mrb[10].mxu0 }
 0x397   : > { %v2492_v58 = vpop.f32.mrb[11].mxu0 }
 0x3a7   : > { %958 = vrot.lane.b32.xlu1 %v2980_v41, %s2763_s21 }
 0x3ab   : > { %1007 = vrot.lane.b32.xlu1 %v2983_v44, %s2763_s21  ;;  %s2774_s21 = smov 16  }
 0x3af   : > { %1059 = vrot.lane.b32.xlu1 %v2980_v41, %s2764_s23 }
 0x41b   : > { %v936_v59 = vpop.xlane.xlu1 %935 }
 0x41c   : > { %v940_v60 = vsub.f32 %v879_v49, %v936_v59 }
 0x41e   : > { %v942_v61 = vmul.f32 1.442695, %v940_v60 }
 0x420   : > { %2672 = vpow2.f32 %v942_v61 }
 0x423   : > { %v939_v62 = vpop.xlane.xlu1 %938 }
 0x424   : > { %v941_v63 = vsub.f32 %v928_v54, %v939_v62 }
 0x426   : > { %v944_v0 = vmul.f32 1.442695, %v941_v63 }
 0x427   : > { %v959_v1 = vpop.permute.xlu1 %958 }
 0x428   : > { %2674 = vpow2.f32 %v944_v0  ;;  %v965_v2 = vsel %vm963_vm4, %v959_v1, 0 }
 0x429   : > { %2494 = vmatpush3.bf16.msra.mxu1 %v965_v2 }
 0x42a   : > { %v2673_v3 = vpop.eup %2672  ;;  %2505 = vmatprep.subr.bf16.mxu1 %v2760_v31 }
 0x42b   : > { %v1008_v4 = vpop.permute.xlu1 %1007  ;;  %v946_v5 = vsel %vm838_vm3, %v2673_v3, 0.0 }
 0x42c   : > { %v1013_v6 = vsel %vm963_vm4, %v1008_v4, 0  ;;  %947 = vadd.xlane.f32.xlu0 %v946_v5 }
 0x42d   : > { %2500 = vmatpush3.bf16.msra.mxu0 %v1013_v6 }
 0x42e   : > { %2511 = vmatprep.subr.bf16.mxu0 %v2760_v31 }
 0x42f   : > { %v1060_v10 = vpop.permute.xlu1 %1059 }
 0x430   : > { %v1065_v15 = vsel %vm838_vm3, %v1060_v10, 0 }
 0x432   : > { %v2675_v7 = vpop.eup %2674 }
 0x433   : > { %v949_v8 = vsel %vm838_vm3, %v2675_v7, 0.0 }
 0x434   : > { %950 = vadd.xlane.f32.xlu1 %v949_v8 }
 0x442   : > { %1057 = vrot.lane.b32.xlu0 %v2980_v41, %s2765_s0 }
 0x445   : > { %1109 = vrot.lane.b32.xlu1 %v2983_v44, %s2764_s23  ;;  %s3271_s23 = sld [smem:[#allocation8_spill]] }
 0x449   : > { %1107 = vrot.lane.b32.xlu1 %v2983_v44, %s2765_s0  ;;  %s2775_s0 = smov 24  }
 0x4b9   : > { %v948_v9 = vpop.xlane.xlu0 %947 }
 0x4ba   : > { %2676 = vrcp.f32 %v948_v9 }
 0x4bd   : > { %v1058_v20 = vpop.permute.xlu0 %1057 }
 0x4c1   : > { %v951_v11 = vpop.xlane.xlu1 %950 }
 0x4c2   : > { %2678 = vrcp.f32 %v951_v11 }
 0x4c4   : > { %v2677_v12 = vpop.eup %2676 }
 0x4c5   : > { %v954_v13 = vmul.f32 %v2677_v12, %v2673_v3  ;;  %v1110_v18 = vpop.permute.xlu1 %1109 }
 0x4c6   : > { %v1115_v21 = vsel %vm838_vm3, %v1110_v18, 0 }
 0x4c7   : > { %v956_v14 = vpack.c.bf16 %v954_v13, %v954_v13 }
 0x4c9   : > { %2496 = vmatmul.mubr.msk.bf16.vlgmr.msra.gmra.mrb[0].mxu1 %vm838_vm3, %v956_v14  ;;  %v1108_v22 = vpop.permute.xlu1 %1107 }
 0x4ca   : > { %2506 = vmatpush3.bf16.xpose.msra.mxu1 %v1065_v15  ;;  %2507 = vmatprep.mubr.msk.bf16.mxu1 %vm2761_vm1, %v2760_v31 }
 0x4cb   : > { %2517 = vmatprep.subr.bf16.mxu1 %v2760_v31 }
 0x4cc   : > { %v2679_v16 = vpop.eup %2678 }
 0x4cd   : > { %v955_v17 = vmul.f32 %v2679_v16, %v2675_v7 }
 0x4cf   : > { %v957_v19 = vpack.c.bf16 %v955_v17, %v955_v17 }
 0x4d1   : > { %2502 = vmatmul.mubr.msk.bf16.vlgmr.msra.gmra.mrb[12].mxu0 %vm838_vm3, %v957_v19  ;;  %2508 = vmatmul.mubr.msk.bf16.vlgmr.msra.gmra.mrb[4].mxu1 %vm838_vm3, %v1058_v20 }
 0x4d2   : > { %2512 = vmatpush3.bf16.xpose.msra.mxu0 %v1115_v21  ;;  %2513 = vmatprep.mubr.msk.bf16.mxu0 %vm2761_vm1, %v2760_v31 }
 0x4d3   : > { %2523 = vmatprep.subr.bf16.mxu0 %v2760_v31  ;;  %2519 = vmatprep.mubr.msk.bf16.mxu1 %vm2761_vm1, %v2760_v31 }
 0x4d9   : > { %2514 = vmatmul.mubr.msk.bf16.vlgmr.msra.gmra.mrb[16].mxu0 %vm838_vm3, %v1108_v22 }
 0x4da   : > { %2525 = vmatprep.mubr.msk.bf16.mxu0 %vm2761_vm1, %v2760_v31 }
 0x59c   : > { %v1001_v23 = vpop.f32.mrb[0].mxu1 }
 0x59d   : > { %1055 = vst.msk [vmem:[#allocation3] sm:$0xff] %vm838_vm3, %v1001_v23  ;;  %v2497_v24 = vpop.f32.mrb[1].mxu1 }
 0x59e   : > { %v1004_v25 = vpop.f32.mrb[2].mxu1 }
 0x59f   : > { %v2498_v26 = vpop.f32.mrb[3].mxu1 }
 0x5a4   : > { %v1049_v27 = vpop.f32.mrb[12].mxu0  ;;  %v1101_v28 = vpop.f32.mrb[4].mxu1 }
 0x5a5   : > { %1056 = vst.msk [vmem:[#allocation3 + $0x8] sm:$0xff] %vm838_vm3, %v1049_v27  ;;  %v2503_v29 = vpop.f32.mrb[13].mxu0  ;;  %v2509_v30 = vpop.f32.mrb[5].mxu1  ;;  %v1157_v32 = vsel %vm838_vm3, %v1101_v28, -inf }
 0x5a6   : > { %1158 = vmax.xlane.f32.xlu1 %v1157_v32  ;;  %v1052_v35 = vpop.f32.mrb[14].mxu0  ;;  %v1104_v36 = vpop.f32.mrb[6].mxu1 }
 0x5a7   : > { %v2504_v37 = vpop.f32.mrb[15].mxu0  ;;  %v2510_v38 = vpop.f32.mrb[7].mxu1 }
 0x5ac   : > { %v1151_v39 = vpop.f32.mrb[16].mxu0 }
 0x5ad   : > { %v2515_v40 = vpop.f32.mrb[17].mxu0  ;;  %v1160_v42 = vsel %vm838_vm3, %v1151_v39, -inf }
 0x5ae   : > { %1161 = vmax.xlane.f32.xlu0 %v1160_v42  ;;  %v1154_v43 = vpop.f32.mrb[18].mxu0 }
 0x5af   : > { %v2516_v45 = vpop.f32.mrb[19].mxu0 }
 0x5b7   : > { %1181 = vrot.lane.b32.xlu1 %v2980_v41, %s2766_s16 }
 0x5bb   : > { %1290 = vrot.lane.b32.xlu1 %v2980_v41, %s2767_s17 }
 0x5c4   : > { %1229 = vrot.lane.b32.xlu0 %v2983_v44, %s2766_s16 }
 0x5c8   : > { %1288 = vrot.lane.b32.xlu0 %v2980_v41, %s2768_s29 }
 0x633   : > { %v1159_v46 = vpop.xlane.xlu1 %1158 }
 0x634   : > { %v1163_v47 = vsub.f32 %v1101_v28, %v1159_v46 }
 0x636   : > { %v1165_v48 = vmul.f32 1.442695, %v1163_v47 }
 0x637   : > { %v1182_v49 = vpop.permute.xlu1 %1181 }
 0x638   : > { %2680 = vpow2.f32 %v1165_v48  ;;  %v1187_v50 = vsel %vm963_vm4, %v1182_v49, 0 }
 0x639   : > { %2518 = vmatpush3.bf16.msra.mxu1 %v1187_v50 }
 0x63a   : > { %2529 = vmatprep.subr.bf16.mxu1 %v2760_v31 }
 0x63b   : > { %v1162_v51 = vpop.xlane.xlu0 %1161  ;;  %v1291_v60 = vpop.permute.xlu1 %1290 }
 0x63c   : > { %v1164_v52 = vsub.f32 %v1151_v39, %v1162_v51  ;;  %v1296_v2 = vsel %vm838_vm3, %v1291_v60, 0 }
 0x63e   : > { %v1167_v53 = vmul.f32 1.442695, %v1164_v52 }
 0x63f   : > { %v1230_v54 = vpop.permute.xlu0 %1229 }
 0x640   : > { %2682 = vpow2.f32 %v1167_v53  ;;  %v1235_v55 = vsel %vm963_vm4, %v1230_v54, 0 }
 0x641   : > { %2524 = vmatpush3.bf16.msra.mxu0 %v1235_v55 }
 0x642   : > { %v2681_v56 = vpop.eup %2680  ;;  %2535 = vmatprep.subr.bf16.mxu0 %v2760_v31 }
 0x643   : > { %v1169_v57 = vsel %vm838_vm3, %v2681_v56, 0.0  ;;  %v1289_v7 = vpop.permute.xlu0 %1288 }
 0x644   : > { %1170 = vadd.xlane.f32.xlu1 %v1169_v57 }
 0x64a   : > { %v2683_v58 = vpop.eup %2682 }
 0x64b   : > { %v1172_v59 = vsel %vm838_vm3, %v2683_v58, 0.0 }
 0x64c   : > { %1173 = vadd.xlane.f32.xlu1 %v1172_v59 }
 0x65d   : > { %1340 = vrot.lane.b32.xlu1 %v2983_v44, %s2767_s17 }
 0x661   : > { %1338 = vrot.lane.b32.xlu1 %v2983_v44, %s2768_s29  ;;  %s3272_s29 = scalar_lea.vmem %s3240_s6, %s2881_s26 }
 0x6d1   : > { %v1171_v61 = vpop.xlane.xlu1 %1170 }
 0x6d2   : > { %2684 = vrcp.f32 %v1171_v61 }
 0x6d9   : > { %v1174_v62 = vpop.xlane.xlu1 %1173 }
 0x6da   : > { %2686 = vrcp.f32 %v1174_v62 }
 0x6dc   : > { %v2685_v63 = vpop.eup %2684 }
 0x6dd   : > { %v1177_v0 = vmul.f32 %v2685_v63, %v2681_v56  ;;  %v1341_v5 = vpop.permute.xlu1 %1340 }
 0x6de   : > { %v1346_v8 = vsel %vm838_vm3, %v1341_v5, 0 }
 0x6df   : > { %v1179_v1 = vpack.c.bf16 %v1177_v0, %v1177_v0 }
 0x6e1   : > { %2520 = vmatmul.mubr.msk.bf16.vlgmr.msra.gmra.mrb[8].mxu1 %vm838_vm3, %v1179_v1  ;;  %v1339_v9 = vpop.permute.xlu1 %1338 }
 0x6e2   : > { %2530 = vmatpush3.bf16.xpose.msra.mxu1 %v1296_v2  ;;  %2531 = vmatprep.mubr.msk.bf16.mxu1 %vm2761_vm1, %v2760_v31 }
 0x6e3   : > { %2541 = vmatprep.subr.bf16.mxu1 %v2760_v31 }
 0x6e4   : > { %v2687_v3 = vpop.eup %2686 }
 0x6e5   : > { %v1178_v4 = vmul.f32 %v2687_v3, %v2683_v58 }
 0x6e7   : > { %v1180_v6 = vpack.c.bf16 %v1178_v4, %v1178_v4 }
 0x6e9   : > { %2526 = vmatmul.mubr.msk.bf16.vlgmr.msra.gmra.mrb[20].mxu0 %vm838_vm3, %v1180_v6  ;;  %2532 = vmatmul.mubr.msk.bf16.vlgmr.msra.gmra.mrb[12].mxu1 %vm838_vm3, %v1289_v7 }
 0x6ea   : > { %2536 = vmatpush3.bf16.xpose.msra.mxu0 %v1346_v8  ;;  %2537 = vmatprep.mubr.msk.bf16.mxu0 %vm2761_vm1, %v2760_v31 }
 0x6eb   : > { %2547 = vmatprep.subr.bf16.mxu0 %v2760_v31  ;;  %2543 = vmatprep.mubr.msk.bf16.mxu1 %vm2761_vm1, %v2760_v31 }
 0x6f1   : > { %2538 = vmatmul.mubr.msk.bf16.vlgmr.msra.gmra.mrb[24].mxu0 %vm838_vm3, %v1339_v9 }
 0x6f2   : > { %2549 = vmatprep.mubr.msk.bf16.mxu0 %vm2761_vm1, %v2760_v31 }
 0x7b4   : > { %v3060_v10 = vpop.f32.mrb[8].mxu1 }
 0x7b5   : > { %v2521_v11 = vpop.f32.mrb[9].mxu1 }
 0x7b6   : > { %v1226_v12 = vpop.f32.mrb[10].mxu1 }
 0x7b7   : > { %v2522_v13 = vpop.f32.mrb[11].mxu1 }
 0x7bc   : > { %v3062_v14 = vpop.f32.mrb[20].mxu0  ;;  %v1332_v15 = vpop.f32.mrb[12].mxu1 }
 0x7bd   : > { %v2527_v16 = vpop.f32.mrb[21].mxu0  ;;  %v2533_v17 = vpop.f32.mrb[13].mxu1  ;;  %v1388_v18 = vsel %vm838_vm3, %v1332_v15, -inf }
 0x7be   : > { %1389 = vmax.xlane.f32.xlu0 %v1388_v18  ;;  %v1274_v19 = vpop.f32.mrb[22].mxu0  ;;  %v1335_v20 = vpop.f32.mrb[14].mxu1 }
 0x7bf   : > { %v2528_v21 = vpop.f32.mrb[23].mxu0  ;;  %v2534_v22 = vpop.f32.mrb[15].mxu1 }
 0x7c4   : > { %v1382_v23 = vpop.f32.mrb[24].mxu0 }
 0x7c5   : > { %v2539_v24 = vpop.f32.mrb[25].mxu0  ;;  %v1391_v25 = vsel %vm838_vm3, %v1382_v23, -inf }
 0x7c6   : > { %1392 = vmax.xlane.f32.xlu1 %v1391_v25  ;;  %v1385_v26 = vpop.f32.mrb[26].mxu0 }
 0x7c7   : > { %v2540_v27 = vpop.f32.mrb[27].mxu0 }
 0x7d7   : > { %1412 = vrot.lane.b32.xlu1 %v2980_v41, %s2769_s27 }
 0x7db   : > { %1521 = vrot.lane.b32.xlu1 %v2980_v41, %s2770_s19 }
 0x7df   : > { %1571 = vrot.lane.b32.xlu1 %v2983_v44, %s2770_s19 }
 0x7e3   : > { %1569 = vrot.lane.b32.xlu1 %v2983_v44, %s2771_s18 }
 0x84b   : > { %v1390_v28 = vpop.xlane.xlu0 %1389 }
 0x84c   : > { %v1394_v29 = vsub.f32 %v1332_v15, %v1390_v28 }
 0x84e   : > { %v1396_v30 = vmul.f32 1.442695, %v1394_v29 }
 0x850   : > { %2688 = vpow2.f32 %v1396_v30 }
 0x853   : > { %v1393_v32 = vpop.xlane.xlu1 %1392 }
 0x854   : > { %v1395_v35 = vsub.f32 %v1382_v23, %v1393_v32 }
 0x856   : > { %v1398_v36 = vmul.f32 1.442695, %v1395_v35 }
 0x857   : > { %v1413_v37 = vpop.permute.xlu1 %1412 }
 0x858   : > { %2690 = vpow2.f32 %v1398_v36  ;;  %v1418_v38 = vsel %vm963_vm4, %v1413_v37, 0 }
 0x859   : > { %2542 = vmatpush3.bf16.msra.mxu1 %v1418_v38 }
 0x85a   : > { %v2689_v39 = vpop.eup %2688  ;;  %2553 = vmatprep.subr.bf16.mxu1 %v2760_v31 }
 0x85b   : > { %v1400_v40 = vsel %vm838_vm3, %v2689_v39, 0.0  ;;  %v1522_v50 = vpop.permute.xlu1 %1521 }
 0x85c   : > { %1401 = vadd.xlane.f32.xlu0 %v1400_v40  ;;  %v1527_v53 = vsel %vm838_vm3, %v1522_v50, 0 }
 0x85f   : > { %v1572_v56 = vpop.permute.xlu1 %1571 }
 0x860   : > { %v1577_v59 = vsel %vm838_vm3, %v1572_v56, 0 }
 0x862   : > { %v2691_v42 = vpop.eup %2690 }
 0x863   : > { %v1403_v43 = vsel %vm838_vm3, %v2691_v42, 0.0  ;;  %v1570_v60 = vpop.permute.xlu1 %1569 }
 0x864   : > { %1404 = vadd.xlane.f32.xlu0 %v1403_v43  ;;  %v2660_v43 = vld [vmem:[%s3271_s23] sm:$0xff]  }
 0x87a   : > { %1460 = vrot.lane.b32.xlu0 %v2983_v44, %s2769_s27  ;;  %s3275_s27 = sld [smem:[#allocation13_spill]] (!%p2407_p5) }
 0x87e   : > { %1519 = vrot.lane.b32.xlu0 %v2980_v41, %s2771_s18  ;;  %s3276_s18 = sld [smem:[#allocation14_spill]] (!%p2407_p5) }
 0x8e9   : > { %v1402_v45 = vpop.xlane.xlu0 %1401 }
 0x8ea   : > { %2692 = vrcp.f32 %v1402_v45  ;;  %v2661_v45 = vld [vmem:[%s3271_s23 + $0x8] sm:$0xff]  }
 0x8f1   : > { %v1405_v46 = vpop.xlane.xlu0 %1404 }
 0x8f2   : > { %2694 = vrcp.f32 %v1405_v46 }
 0x8f4   : > { %v2693_v47 = vpop.eup %2692 }
 0x8f5   : > { %v1408_v48 = vmul.f32 %v2693_v47, %v2689_v39  ;;  %v1461_v49 = vpop.permute.xlu0 %1460 }
 0x8f6   : > { %v1466_v51 = vsel %vm963_vm4, %v1461_v49, 0 }
 0x8f7   : > { %2548 = vmatpush3.bf16.msra.mxu0 %v1466_v51  ;;  %v1410_v52 = vpack.c.bf16 %v1408_v48, %v1408_v48 }
 0x8f8   : > { %2559 = vmatprep.subr.bf16.mxu0 %v2760_v31 }
 0x8f9   : > { %2544 = vmatmul.mubr.msk.bf16.vlgmr.msra.gmra.mrb[16].mxu1 %vm838_vm3, %v1410_v52  ;;  %v1520_v58 = vpop.permute.xlu0 %1519 }
 0x8fa   : > { %2554 = vmatpush3.bf16.xpose.msra.mxu1 %v1527_v53  ;;  %2555 = vmatprep.mubr.msk.bf16.mxu1 %vm2761_vm1, %v2760_v31 }
 0x8fb   : > { %2565 = vmatprep.subr.bf16.mxu1 %v2760_v31 }
 0x8fc   : > { %v2695_v54 = vpop.eup %2694 }
 0x8fd   : > { %v1409_v55 = vmul.f32 %v2695_v54, %v2691_v42 }
 0x8ff   : > { %v1411_v57 = vpack.c.bf16 %v1409_v55, %v1409_v55 }
 0x901   : > { %2550 = vmatmul.mubr.msk.bf16.vlgmr.msra.gmra.mrb[28].mxu0 %vm838_vm3, %v1411_v57  ;;  %2556 = vmatmul.mubr.msk.bf16.vlgmr.msra.gmra.mrb[20].mxu1 %vm838_vm3, %v1520_v58 }
 0x902   : > { %2560 = vmatpush3.bf16.xpose.msra.mxu0 %v1577_v59  ;;  %2561 = vmatprep.mubr.msk.bf16.mxu0 %vm2761_vm1, %v2760_v31  ;;  %v2386_v59 = vld [vmem:[%s3272_s29] ss:$0 sm:$0xff] }
 0x903   : > { %2571 = vmatprep.subr.bf16.mxu0 %v2760_v31  ;;  %2567 = vmatprep.mubr.msk.bf16.mxu1 %vm2761_vm1, %v2760_v31 }
 0x909   : > { %2562 = vmatmul.mubr.msk.bf16.vlgmr.msra.gmra.mrb[32].mxu0 %vm838_vm3, %v1570_v60 }
 0x90a   : > { %2573 = vmatprep.mubr.msk.bf16.mxu0 %vm2761_vm1, %v2760_v31 }
 0x9cc   : > { %v1454_v61 = vpop.f32.mrb[16].mxu1 }
 0x9cd   : > { %v2545_v62 = vpop.f32.mrb[17].mxu1 }
 0x9ce   : > { %v1457_v63 = vpop.f32.mrb[18].mxu1 }
 0x9cf   : > { %v2546_v0 = vpop.f32.mrb[19].mxu1 }
 0x9d4   : > { %v1502_v1 = vpop.f32.mrb[28].mxu0  ;;  %v1563_v2 = vpop.f32.mrb[20].mxu1 }
 0x9d5   : > { %v2551_v3 = vpop.f32.mrb[29].mxu0  ;;  %v2557_v4 = vpop.f32.mrb[21].mxu1  ;;  %v1619_v5 = vsel %vm838_vm3, %v1563_v2, -inf }
 0x9d6   : > { %1620 = vmax.xlane.f32.xlu0 %v1619_v5  ;;  %v1505_v6 = vpop.f32.mrb[30].mxu0  ;;  %v1566_v7 = vpop.f32.mrb[22].mxu1 }
 0x9d7   : > { %v2552_v8 = vpop.f32.mrb[31].mxu0  ;;  %v2558_v9 = vpop.f32.mrb[23].mxu1 }
 0x9dc   : > { %v1613_v11 = vpop.f32.mrb[32].mxu0 }
 0x9dd   : > { %v2563_v12 = vpop.f32.mrb[33].mxu0  ;;  %v1622_v13 = vsel %vm838_vm3, %v1613_v11, -inf }
 0x9de   : > { %1623 = vmax.xlane.f32.xlu1 %v1622_v13  ;;  %v1616_v15 = vpop.f32.mrb[34].mxu0 }
 0x9df   : > { %v2564_v16 = vpop.f32.mrb[35].mxu0 }
 0x9ef   : > { %1643 = vrot.lane.b32.xlu1 %v2980_v41, %s2772_s1 }
 0x9f3   : > { %1279 = vrot.lane.b32.xlu1 %v3060_v10, %s2773_s20 }
 0x9f7   : > { %1281 = vrot.lane.b32.xlu1 %v3062_v14, %s2773_s20  ;;  %s3274_s20 = scalar_lea.vmem %s3242_s8, %s2881_s26 }
 0x9fb   : > { %1512 = vrot.lane.b32.xlu1 %v1502_v1, %s2774_s21 }
 0xa63   : > { %v1621_v17 = vpop.xlane.xlu0 %1620 }
 0xa64   : > { %v1625_v18 = vsub.f32 %v1563_v2, %v1621_v17  ;;  %v2663_v17 = vld [vmem:[%s2913_s3 + $0x8] sm:$0xff]  }
 0xa66   : > { %v1627_v19 = vmul.f32 1.442695, %v1625_v18 }
 0xa68   : > { %2696 = vpow2.f32 %v1627_v19 }
 0xa6b   : > { %v1624_v20 = vpop.xlane.xlu1 %1623 }
 0xa6c   : > { %v1626_v21 = vsub.f32 %v1613_v11, %v1624_v20 }
 0xa6e   : > { %v1629_v22 = vmul.f32 1.442695, %v1626_v21 }
 0xa6f   : > { %v1644_v23 = vpop.permute.xlu1 %1643 }
 0xa70   : > { %2698 = vpow2.f32 %v1629_v22  ;;  %v1649_v24 = vsel %vm963_vm4, %v1644_v23, 0 }
 0xa71   : > { %2566 = vmatpush3.bf16.msra.mxu1 %v1649_v24 }
 0xa72   : > { %v2697_v41 = vpop.eup %2696  ;;  %2577 = vmatprep.subr.bf16.mxu1 %v2760_v31 }
 0xa73   : > { %v1280_v10 = vpop.permute.xlu1 %1279  ;;  %v1631_v14 = vsel %vm838_vm3, %v2697_v41, 0.0 }
 0xa74   : > { %1286 = vst.msk [vmem:[#allocation3] sm:$0xff] %vm1285_vm5, %v1280_v10  ;;  %1632 = vadd.xlane.f32.xlu0 %v1631_v14 }
 0xa77   : > { %v1282_v25 = vpop.permute.xlu1 %1281 }
 0xa78   : > { %1287 = vst.msk [vmem:[#allocation3 + $0x8] sm:$0xff] %vm1285_vm5, %v1282_v25 }
 0xa7a   : > { %v2699_v26 = vpop.eup %2698 }
 0xa7b   : > { %v1513_v27 = vpop.permute.xlu1 %1512  ;;  %v1634_v28 = vsel %vm838_vm3, %v2699_v26, 0.0 }
 0xa7c   : > { %1518 = vst.msk [vmem:[#allocation3 + $0x8] sm:$0xff] %vm1516_vm6, %v1513_v27  ;;  %1635 = vadd.xlane.f32.xlu0 %v1634_v28  ;;  %v2391_v27 = vld [vmem:[%s3274_s20] ss:$0 sm:$0xff] }
 0xa92   : > { %1691 = vrot.lane.b32.xlu0 %v2983_v44, %s2772_s1 }
 0xa96   : > { %1510 = vrot.lane.b32.xlu0 %v1454_v61, %s2774_s21 }
 0xb01   : > { %v1633_v29 = vpop.xlane.xlu0 %1632 }
 0xb02   : > { %2700 = vrcp.f32 %v1633_v29 }
 0xb09   : > { %v1636_v30 = vpop.xlane.xlu0 %1635 }
 0xb0a   : > { %2702 = vrcp.f32 %v1636_v30 }
 0xb0c   : > { %v2701_v32 = vpop.eup %2700 }
 0xb0d   : > { %v1639_v35 = vmul.f32 %v2701_v32, %v2697_v41  ;;  %v1692_v36 = vpop.permute.xlu0 %1691 }
 0xb0e   : > { %v1697_v37 = vsel %vm963_vm4, %v1692_v36, 0  ;;  %v2665_v36 = vld [vmem:[%s2923_s24 + $0x8] sm:$0xff]  }
 0xb0f   : > { %2572 = vmatpush3.bf16.msra.mxu0 %v1697_v37  ;;  %v1641_v38 = vpack.c.bf16 %v1639_v35, %v1639_v35  ;;  %v2664_v35 = vld [vmem:[%s2923_s24] sm:$0xff]   ;;  %v2666_v37 = vld [vmem:[%s2923_s24 + $0x10] sm:$0xff]  }
 0xb10   : > { %2585 = vmatprep.subr.bf16.mxu0 %v2760_v31 }
 0xb11   : > { %v1511_v39 = vpop.permute.xlu0 %1510  ;;  %2568 = vmatmul.mubr.msk.bf16.vlgmr.msra.gmra.mrb[24].mxu1 %vm838_vm3, %v1641_v38  ;;  %v2667_v38 = vld [vmem:[%s2923_s24 + $0x18] sm:$0xff]  }
 0xb12   : > { %1517 = vst.msk [vmem:[#allocation3] sm:$0xff] %vm1516_vm6, %v1511_v39  ;;  %2581 = vmatprep.mubr.msk.bf16.mxu1 %vm2761_vm1, %v2760_v31  ;;  %2578 = vmatpush3.bf16.msra.mxu1 %v2660_v43  ;;  %v2668_v39 = vld [vmem:[%s2923_s24 + $0x20] sm:$0xff]  }
 0xb13   : > { %2579 = vmatprep.subr.bf16.mxu1 %v2760_v31  ;;  %v2392_v43 = vld [vmem:[%s692_s5] ss:$0 sm:$0xff] }
 0xb14   : > { %v2703_v44 = vpop.eup %2702 }
 0xb15   : > { %v1640_v40 = vmul.f32 %v2703_v44, %v2699_v26  ;;  %v2669_v44 = vld [vmem:[%s2923_s24 + $0x28] sm:$0xff]  }
 0xb16   : > { %2580 = vmatpush3.bf16.msra.mxu1 %v2661_v45 }
 0xb17   : > { %v1642_v42 = vpack.c.bf16 %v1640_v40, %v1640_v40  ;;  %2593 = vmatprep.subr.bf16.mxu1 %v2760_v31  ;;  %v2670_v40 = vld [vmem:[%s2923_s24 + $0x30] sm:$0xff]  }
 0xb19   : > { %2574 = vmatmul.mubr.msk.bf16.vlgmr.msra.gmra.mrb[36].mxu0 %vm838_vm3, %v1642_v42  ;;  %v2671_v42 = vld [vmem:[%s2923_s24 + $0x38] sm:$0xff]  }
 0xb1a   : > { %2589 = vmatprep.mubr.msk.bf16.mxu0 %vm2761_vm1, %v2760_v31 }
 0xbe4   : > { %v1685_v46 = vpop.f32.mrb[24].mxu1 }
 0xbe5   : > { %1741 = vrot.lane.b32.xlu0 %v1685_v46, %s2775_s0  ;;  %v2569_v47 = vpop.f32.mrb[25].mxu1 }
 0xbe6   : > { %v1688_v48 = vpop.f32.mrb[26].mxu1 }
 0xbe7   : > { %v2570_v49 = vpop.f32.mrb[27].mxu1 }
 0xbec   : > { %v1733_v50 = vpop.f32.mrb[36].mxu0 }
 0xbed   : > { %1743 = vrot.lane.b32.xlu1 %v1733_v50, %s2775_s0  ;;  %v2575_v51 = vpop.f32.mrb[37].mxu0 }
 0xbee   : > { %v1736_v52 = vpop.f32.mrb[38].mxu0 }
 0xbef   : > { %v2576_v53 = vpop.f32.mrb[39].mxu0 }
 0xc57   : > { %v1742_v54 = vpop.permute.xlu0 %1741 }
 0xc58   : > { %1748 = vst.msk [vmem:[#allocation3] sm:$0xff] %vm1747_vm7, %v1742_v54 }
 0xc5f   : > { %v1744_v55 = vpop.permute.xlu1 %1743  ;;  %v1750_v56 = vld [vmem:[#allocation3] sm:$0xff] }
 0xc60   : > { %1749 = vst.msk [vmem:[#allocation3 + $0x8] sm:$0xff] %vm1747_vm7, %v1744_v55 }
 0xc67   : > { %v1751_v57 = vld [vmem:[#allocation3 + $0x8] sm:$0xff] }
 0xc68   : > { %v1752_v58 = vpack.c.bf16 %v1751_v57, %v1750_v56 }
 0xc6a   : > { %2582 = vmatmul.mubr.msk.bf16.vlgmr.msra.gmra.mrb[28].mxu1 %vm788_vm2, %v1752_v58 }
 0xc6b   : > { %2609 = vmatprep.mubr.msk.bf16.mxu1 %vm2761_vm1, %v2760_v31  ;;  %2594 = vmatpush3.bf16.msra.mxu1 %v2664_v35 }
 0xc6c   : > { %2595 = vmatprep.subr.bf16.mxu1 %v2760_v31 }
 0xc6f   : > { %2596 = vmatpush3.bf16.msra.mxu1 %v2665_v36  ;;  %v2406_v36 = vld [vmem:[%s706_s15] ss:$0 sm:$0xff] }
 0xc70   : > { %2597 = vmatprep.subr.bf16.mxu1 %v2760_v31 }
 0xc73   : > { %2598 = vmatpush3.bf16.msra.mxu1 %v2666_v37 }
 0xc74   : > { %2599 = vmatprep.subr.bf16.mxu1 %v2760_v31 }
 0xc77   : > { %2600 = vmatpush3.bf16.msra.mxu1 %v2667_v38 }
 0xc78   : > { %2601 = vmatprep.subr.bf16.mxu1 %v2760_v31 }
 0xc7b   : > { %2602 = vmatpush3.bf16.msra.mxu1 %v2668_v39 }
 0xc7c   : > { %2603 = vmatprep.subr.bf16.mxu1 %v2760_v31 }
 0xc7f   : > { %2604 = vmatpush3.bf16.msra.mxu1 %v2669_v44 }
 0xc80   : > { %2605 = vmatprep.subr.bf16.mxu1 %v2760_v31 }
 0xc83   : > { %2606 = vmatpush3.bf16.msra.mxu1 %v2670_v40 }
 0xc84   : > { %2607 = vmatprep.subr.bf16.mxu1 %v2760_v31 }
 0xc87   : > { %2608 = vmatpush3.bf16.msra.mxu1 %v2671_v42  ;;  %v2716_v42 = vld [vmem:[%s3275_s27] sm:$0xff] (!%p2407_p5)  }
 0xd3d   : > { %v1813_v60 = vpop.f32.mrb[28].mxu1 }
 0xd3e   : > { %v1814_v61 = vadd.f32 %v2386_v59, %v1813_v60  ;;  %v2583_v62 = vpop.f32.mrb[29].mxu1 }
 0xd3f   : > { %v1816_v63 = vpop.f32.mrb[30].mxu1 }
 0xd40   : > { %v1817_v0 = vadd.f32 %v2386_v59, %v1816_v63  ;;  %v2584_v1 = vpop.f32.mrb[31].mxu1  ;;  %v1820_v2 = vadd.f32 %v1814_v61, %v2962_v33 }
 0xd42   : > { %v1824_v3 = vsel %vm788_vm2, %v1820_v2, 0.0  ;;  %v1821_v4 = vadd.f32 %v1817_v0, %v2964_v34  ;;  %v2662_v34 = vld [vmem:[%s2913_s3] sm:$0xff]   ;;  %s3273_s3 = scalar_lea.vmem %s3241_s7, %s2881_s26 }
 0xd43   : > { %1825 = vadd.xlane.f32.xlu0 %v1824_v3  ;;  %2586 = vmatpush3.bf16.msra.mxu0 %v2662_v34  ;;  %v2390_v10 = vld [vmem:[%s3273_s3] ss:$0 sm:$0xff] }
 0xd44   : > { %v1827_v5 = vsel %vm788_vm2, %v1821_v4, 0.0  ;;  %2587 = vmatprep.subr.bf16.mxu0 %v2760_v31 }
 0xd45   : > { %1828 = vadd.xlane.f32.xlu1 %v1827_v5  ;;  %v2396_v5 = vld [vmem:[%s700_s28] ss:$0 sm:$0xff] }
 0xd47   : > { %2588 = vmatpush3.bf16.msra.mxu0 %v2663_v17 }
 0xdd0   : > { %v1826_v6 = vpop.xlane.xlu0 %1825 }
 0xdd1   : > { %v1831_v7 = vmul.f32 0.03125, %v1826_v6 }
 0xdd2   : > { %v1829_v8 = vpop.xlane.xlu1 %1828 }
 0xdd3   : > { %v1833_v9 = vsub.f32 %v1820_v2, %v1831_v7  ;;  %v1832_v11 = vmul.f32 0.03125, %v1829_v8 }
 0xdd5   : > { %v1834_v12 = vsub.f32 %v1821_v4, %v1832_v11  ;;  %v1835_v13 = vmul.f32 %v1833_v9, %v1833_v9 }
 0xdd7   : > { %v1837_v15 = vsel %vm788_vm2, %v1835_v13, 0.0  ;;  %v1836_v33 = vmul.f32 %v1834_v12, %v1834_v12 }
 0xdd8   : > { %1838 = vadd.xlane.f32.xlu0 %v1837_v15 }
 0xdd9   : > { %v1840_v16 = vsel %vm788_vm2, %v1836_v33, 0.0 }
 0xddc   : > { %1841 = vadd.xlane.f32.xlu0 %v1840_v16 }
 0xe65   : > { %v1839_v18 = vpop.xlane.xlu0 %1838 }
 0xe66   : > { %v1843_v19 = vmul.f32 0.03125, %v1839_v18 }
 0xe68   : > { %v1845_v20 = vadd.f32 1e-12, %v1843_v19 }
 0xe69   : > { %v1842_v21 = vpop.xlane.xlu0 %1841 }
 0xe6a   : > { %2704 = vrsqrt.f32 %v1845_v20  ;;  %v1844_v22 = vmul.f32 0.03125, %v1842_v21 }
 0xe6c   : > { %v1846_v23 = vadd.f32 1e-12, %v1844_v22 }
 0xe6e   : > { %2706 = vrsqrt.f32 %v1846_v23 }
 0xe74   : > { %v2705_v24 = vpop.eup %2704 }
 0xe75   : > { %v1849_v41 = vmul.f32 %v2705_v24, %v1833_v9 }
 0xe77   : > { %v1857_v25 = vmul.f32 %v2390_v10, %v1849_v41 }
 0xe78   : > { %v2707_v14 = vpop.eup %2706 }
 0xe79   : > { %v1850_v26 = vmul.f32 %v2707_v14, %v1834_v12  ;;  %v3147_v29 = vadd.f32 %v2391_v27, %v1857_v25 }
 0xe7b   : > { %v1858_v28 = vmul.f32 %v2390_v10, %v1850_v26 }
 0xe7d   : > { %v3149_v30 = vadd.f32 %v2391_v27, %v1858_v28 }
 0xe7f   : > { %v1867_v32 = vpack.c.bf16 %v3149_v30, %v3147_v29 }
 0xe81   : > { %2590 = vmatmul.mubr.msk.bf16.vlgmr.msra.gmra.mrb[40].mxu0 %vm788_vm2, %v1867_v32 }
 0xf54   : > { %v1928_v45 = vpop.f32.mrb[40].mxu0 }
 0xf55   : > { %v1929_v46 = vadd.f32 %v2392_v43, %v1928_v45  ;;  %v2591_v47 = vpop.f32.mrb[41].mxu0  ;;  %v2717_v45 = vld [vmem:[%s3275_s27 + $0x8] sm:$0xff] (!%p2407_p5)  }
 0xf56   : > { %v1931_v48 = vpop.f32.mrb[42].mxu0 }
 0xf57   : > { %v1935_v49 = vmul.f32 %v1929_v46, %v1929_v46  ;;  %v1932_v50 = vadd.f32 %v2392_v43, %v1931_v48  ;;  %v2592_v51 = vpop.f32.mrb[43].mxu0  ;;  %v2776_v43 = vmov (!%p2407_p5), 0.0  }
 0xf58   : > { %2613 = vmatprep.subr.bf16.mxu0 (!%p2407_p5), %v2776_v43  ;;  %2617 = vmatprep.mubr.msk.bf16.mxu0 (!%p2407_p5), %vm2777_vm8, %v2776_v43 }
 0xf59   : > { %v1937_v52 = vmul.f32 %v1935_v49, %v1929_v46  ;;  %v1936_v53 = vmul.f32 %v1932_v50, %v1932_v50  ;;  %2614 = vmatpush3.bf16.msra.mxu0 (!%p2407_p5), %v2716_v42 }
 0xf5a   : > { %2615 = vmatprep.subr.bf16.mxu0 (!%p2407_p5), %v2776_v43 }
 0xf5b   : > { %v1939_v54 = vmul.f32 0.044715, %v1937_v52  ;;  %v1938_v55 = vmul.f32 %v1936_v53, %v1932_v50 }
 0xf5d   : > { %v1941_v56 = vadd.f32 %v1939_v54, %v1929_v46  ;;  %v1940_v31 = vmul.f32 0.044715, %v1938_v55  ;;  %2616 = vmatpush3.bf16.msra.mxu0 (!%p2407_p5), %v2717_v45  ;;  %v2408_v55 = vld [vmem:[%s3276_s18] ss:$0 sm:$0xff] (!%p2407_p5) }
 0xf5f   : > { %v1943_v57 = vmul.f32 0.7978846, %v1941_v56  ;;  %v1942_v58 = vadd.f32 %v1940_v31, %v1932_v50 }
 0xf61   : > { %2708 = vtanh.f32 %v1943_v57  ;;  %v1944_v59 = vmul.f32 0.7978846, %v1942_v58 }
 0xf63   : > { %2710 = vtanh.f32 %v1944_v59 }
 0xf6b   : > { %v2709_v60 = vpop.eup %2708 }
 0xf6c   : > { %v1947_v61 = vadd.f32 1.0, %v2709_v60 }
 0xf6d   : > { %v2711_v62 = vpop.eup %2710 }
 0xf6e   : > { %v1949_v63 = vmul.f32 0.5, %v1947_v61  ;;  %v1948_v0 = vadd.f32 1.0, %v2711_v62 }
 0xf70   : > { %v1950_v1 = vmul.f32 0.5, %v1948_v0  ;;  %v1951_v2 = vmul.f32 %v1949_v63, %v1929_v46 }
 0xf72   : > { %v1952_v3 = vmul.f32 %v1950_v1, %v1932_v50 }
 0xf74   : > { %v1953_v4 = vpack.c.bf16 %v1952_v3, %v1951_v2 }
 0xf76   : > { %2610 = vmatmul.mubr.bf16.vlgmr.msra.gmra.mrb[32].mxu1 %v1953_v4 }
0x1049   : > { %v2059_v6 = vpop.f32.mrb[32].mxu1 }
0x104a   : > { %v2060_v7 = vadd.f32 %v2396_v5, %v2059_v6  ;;  %v2611_v8 = vpop.f32.mrb[33].mxu1 }
0x104b   : > { %v2062_v9 = vpop.f32.mrb[34].mxu1 }
0x104c   : > { %v2063_v11 = vadd.f32 %v2396_v5, %v2062_v9  ;;  %v2612_v12 = vpop.f32.mrb[35].mxu1  ;;  %v2066_v13 = vadd.f32 %v2060_v7, %v3147_v29 }
0x104e   : > { %v2070_v15 = vsel %vm788_vm2, %v2066_v13, 0.0  ;;  %v2067_v33 = vadd.f32 %v2063_v11, %v3149_v30  ;;  %v2405_v30 = vld [vmem:[%s703_s30] ss:$0 sm:$0xff] }
0x104f   : > { %2071 = vadd.xlane.f32.xlu1 %v2070_v15 }
0x1050   : > { %v2073_v16 = vsel %vm788_vm2, %v2067_v33, 0.0 }
0x1051   : > { %2074 = vadd.xlane.f32.xlu0 %v2073_v16 }
0x10dc   : > { %v2072_v34 = vpop.xlane.xlu1 %2071 }
0x10dd   : > { %v2076_v17 = vmul.f32 0.03125, %v2072_v34 }
0x10de   : > { %v2075_v18 = vpop.xlane.xlu0 %2074 }
0x10df   : > { %v2078_v19 = vsub.f32 %v2066_v13, %v2076_v17  ;;  %v2077_v20 = vmul.f32 0.03125, %v2075_v18 }
0x10e1   : > { %v2079_v21 = vsub.f32 %v2067_v33, %v2077_v20  ;;  %v2080_v22 = vmul.f32 %v2078_v19, %v2078_v19 }
0x10e3   : > { %v2082_v23 = vsel %vm788_vm2, %v2080_v22, 0.0  ;;  %v2081_v24 = vmul.f32 %v2079_v21, %v2079_v21 }
0x10e4   : > { %2083 = vadd.xlane.f32.xlu1 %v2082_v23 }
0x10e5   : > { %v2085_v41 = vsel %vm788_vm2, %v2081_v24, 0.0 }
0x10e6   : > { %2086 = vadd.xlane.f32.xlu0 %v2085_v41 }
0x1171   : > { %v2084_v10 = vpop.xlane.xlu1 %2083 }
0x1172   : > { %v2088_v14 = vmul.f32 0.03125, %v2084_v10 }
0x1173   : > { %v2087_v25 = vpop.xlane.xlu0 %2086 }
0x1174   : > { %v2090_v26 = vadd.f32 1e-12, %v2088_v14  ;;  %v2089_v27 = vmul.f32 0.03125, %v2087_v25 }
0x1176   : > { %2712 = vrsqrt.f32 %v2090_v26  ;;  %v2091_v28 = vadd.f32 1e-12, %v2089_v27 }
0x1178   : > { %2714 = vrsqrt.f32 %v2091_v28 }
0x1180   : > { %v2713_v29 = vpop.eup %2712 }
0x1181   : > { %v2094_v32 = vmul.f32 %v2713_v29, %v2078_v19 }
0x1182   : > { %v2715_v35 = vpop.eup %2714 }
0x1183   : > { %v2102_v37 = vmul.f32 %v2405_v30, %v2094_v32  ;;  %v2095_v38 = vmul.f32 %v2715_v35, %v2079_v21  ;;  %2117 = sbr.rel (%p2407_p5) target bundleno = 4724 (0x1274), region = 96 }
0x1185   : > { %v2110_v39 = vadd.f32 %v2406_v36, %v2102_v37  ;;  %v2103_v44 = vmul.f32 %v2405_v30, %v2095_v38 }
0x1187   : > { %2112 = vst.msk [vmem:[#allocation2] sm:$0xff] %vm788_vm2, %v2110_v39  ;;  %v2111_v40 = vadd.f32 %v2406_v36, %v2103_v44  ;;  %2718 = vtanh.f32 (!%p2407_p5), %v2110_v39 }
0x1189   : > { %2113 = vst.msk [vmem:[#allocation2 + $0x8] sm:$0xff] %vm788_vm2, %v2111_v40  ;;  %2720 = vtanh.f32 (!%p2407_p5), %v2111_v40 }
0x1191   : > { %v2719_v46 = vpop.eup %2718 }
0x1192   : > { %v2120_v48 = vpack.c.bf16 %v2719_v46, %v2719_v46 }
0x1193   : > { %v2721_v47 = vpop.eup %2720 }
0x1194   : > { %v2121_v49 = vpack.c.bf16 %v2721_v47, %v2721_v47  ;;  %v2135_v50 = vunpack.c.l.b16 %v2120_v48 }
0x1196   : > { %v2136_v51 = vunpack.c.l.b16 %v2121_v49 }
0x1198   : > { %v2137_v52 = vrot.slane %v2136_v51, 7 }
0x119a   : > { %v2139_v53 = vsel %vm2138_vm9, %v2137_v52, %v2135_v50 }
0x119b   : > { %v2140_v54 = vpack.c.b16 %v2139_v53, %v2139_v53 }
0x119d   : > { %2618 = vmatmul.mubr.msk.bf16.vlgmr.msra.gmra.mrb[0].mxu0 %vm788_vm2, %v2140_v54 }
0x1270   : > { %v2190_v56 = vpop.f32.mrb[0].mxu0 }
0x1271   : > { %v2191_v31 = vadd.f32 %v2408_v55, %v2190_v56  ;;  %v2619_v57 = vpop.f32.mrb[1].mxu0 }
0x1272   : > { %v2193_v58 = vpop.f32.mrb[2].mxu0 }
0x1273   : > { %2196 = vst [vmem:[#allocation4] sm:$0x3] %v2191_v31  ;;  %v2620_v59 = vpop.f32.mrb[3].mxu0 }
0x1274 PF: > { %p2625_p6 = scmp.eq.s32.totalorder %s2875_s25, 1  ;;  %s2778_s1 = smov [#allocation4]  }
0x1275   : > { %s2204_s20 = sshll.u32 %s2778_s1, 4  ;;  %s2205_s20 = int_to_ptr.vmem [resolvable:$true] %s2204_s20 }
0x1276   : > { %s2722_s21 = scalar_lea.vmem %s2205_s20, 32  ;;  %p2729_p10 = scmp.lt.s32.totalorder %s2205_s20, %s2205_s20 }
0x1277   : > { %p2723_p7 = scmp.ne.s32.totalorder %s2205_s20, %s2722_s21  ;;  %p2730_p11 = scmp.lt.s32.totalorder %s2722_s21, %s2722_s21 }
0x1279   : > { %p2724_p8 = pnand %p2723_p7, %p2625_p6  ;;  %p2731_p12 = por %p2730_p11, %p2729_p10 }
0x127b   : > { %p2725_p9 = pneg %p2724_p8 }
0x127d   : > { %p2732_p13 = pnand %p2731_p12, %p2725_p9 }
0x127f   : > { %2735 = shalt.err (!%p2732_p13)
}
0x1280   : > { %s3277_s24 = sld [smem:[#allocation15_spill]] }
0x1286   : > { %s3278_s28 = smov %s3277_s24  ;;  %s2736_s0 = scalar_lea.hbm %s3277_s24, 32 }
0x1287   : > { %p2737_p0 = scmp.ne.s32.totalorder %s3278_s28, %s2736_s0  ;;  %p2742_p3 = scmp.lt.u32.totalorder %s2736_s0, %s3278_s28 }
0x1289   : > { %p2738_p1 = pnand %p2737_p0, %p2625_p6 }
0x128b   : > { %p2739_p2 = pneg %p2738_p1 }
0x128d   : > { %p2744_p4 = pnand %p2742_p3, %p2739_p2 }
0x128f   : > { %2747 = shalt.err (!%p2744_p4)
}
0x1290   : > { %2622 = dma.vmem_to_hbm [thread:$0]  (%p2625_p6), %s2205_s20, 32, %s3278_s28, [#allocation5]  }
0x1291   : > { %2753 = dma.done.wait (%p2625_p6), [#allocation5], 32  }
0x1292   : > { %2755 = vsyncadd (%p2625_p6), [#allocation5], 4294967264 }
0x1293 PF: > { %s3279_s19 = sld [smem:[#allocation7_spill]] }
0x1299   : > { %s28_s24 = sadd.s32 1, %s3279_s19  }
0x129a   : > { %p25_p5 = scmp.ge.s32.totalorder %s28_s24, 4  }
0x129c   :  { %27 = sbr.rel (!%p25_p5) target bundleno = 9 (0x9), region = 156 }
0x12a3   :  { %2217 = vsyncpa [#allocation5], 1 }
0x12a4   :  { %2219 = vsyncpa [#allocation5 + $0x1], 1 }

</bundles_post_ra>
